<compile_context>
chip_gen: v7x
topology: tpu7x:2x2x1
jax: 0.10.0
libtpu: 0.0.40
codegen_flags: <defaults>
</compile_context>

<pallas_src>
import functools

import jax
import jax.numpy as jnp
from jax.experimental import pallas as pl
from jax.experimental.pallas import tpu as pltpu


def crf_nll_kernel(trans_ref, etrans_ref, start_ref, end_ref,
                   lbl_ref, emis_ref, out_ref):
    """Negative log-likelihood of a full-mask linear-chain CRF.

    trans_ref:  (L, L) f32 SMEM  raw transition scores        (numerator)
    etrans_ref: (L, L) f32 SMEM  exp(transition scores)        (denominator, hoisted)
    start_ref:  (1, L) f32 SMEM
    end_ref:    (1, L) f32 SMEM
    lbl_ref:    (T, S, 128) i32 VMEM   labels, batch packed on (sublane, lane)
    emis_ref:   (T, L, S, 128) f32 VMEM
    out_ref:    (S, 128) f32 VMEM      nll per batch element (dense store)
    """
    T, L, S, LN = emis_ref.shape

    # Tiny CRF parameters: hoisted scalar SMEM reads.
    tr_flat = [trans_ref[i, j] for i in range(L) for j in range(L)]
    etr = [[etrans_ref[i, j] for j in range(L)] for i in range(L)]
    st = [start_ref[0, l] for l in range(L)]
    en = [end_ref[0, l] for l in range(L)]

    def hrow(t, l):                       # (S, 128) emission slab at (time t, label l)
        return emis_ref[t, l]

    def lrow(t):                          # (S, 128) labels at time t
        return lbl_ref[t]

    def sel(idx, vals):                   # chained select: vals[k] where idx == k
        r = vals[-1]
        for k in range(len(vals) - 2, -1, -1):
            r = jnp.where(idx == k, vals[k], r)
        return r

    # ---- t = 0: alpha init doubles as the numerator's start+emission term ----
    l_prev = lrow(0)
    alpha = [st[l] + hrow(0, l) for l in range(L)]
    num = sel(l_prev, alpha)

    # ---- fused time loop: numerator selects + denominator forward recursion ----
    for t in range(1, T):
        lt = lrow(t)
        h = [hrow(t, l) for l in range(L)]

        # numerator: transition(l_{t-1} -> l_t) + emission(t, l_t)
        idx = l_prev * L + lt
        num = num + sel(idx, tr_flat) + sel(lt, h)
        l_prev = lt

        # denominator: alpha_j <- m + log(sum_i exp(alpha_i - m) * exp(tr_ij)) + h_j
        # Shared max + precomputed exp(trans): exact rewrite of logsumexp, and
        # numerically fine for moderate transition magnitudes (clamp etrans in
        # the wrapper if transition scores can be huge).
        m = functools.reduce(jnp.maximum, alpha)
        e = [jnp.exp(alpha[i] - m) for i in range(L)]
        alpha = [
            m + jnp.log(functools.reduce(
                jnp.add, [e[i] * etr[i][j] for i in range(L)])) + h[j]
            for j in range(L)
        ]

    # ---- end transitions + final log-partition ----
    num = num + sel(l_prev, en)
    xs = [alpha[l] + en[l] for l in range(L)]
    m = functools.reduce(jnp.maximum, xs)
    s = functools.reduce(jnp.add, [jnp.exp(x - m) for x in xs])
    denom = m + jnp.log(s)

    out_ref[...] = denom - num            # -(path_score - log_partition)


def multi_task_with_crf_forward(emissions, labels, trans, start_trans, end_trans):
    """MultiTaskWithCRF.forward with labels: per-example NLL, shape (B,)."""
    B, T, L = emissions.shape

    # Batch packed onto (sublane, lane): Rp rows of 128 lanes, tiled S rows/step.
    R = pl.cdiv(B, 128)
    if R <= 8:
        Rp, S = R, R                      # single tile; block == full sublane extent
    else:
        Rp, S = pl.cdiv(R, 8) * 8, 8      # (8,128) f32 tiles; grid >= 2 feeds both v7x TCs
    grid = (Rp // S,)
    Btot = Rp * 128

    # (B,T,L) -> (T,L,B) -> pad -> (T,L,Rp,128); single fused pad (no zeros+scatter).
    emis_p = jnp.pad(jnp.transpose(emissions.astype(jnp.float32), (1, 2, 0)),
                     ((0, 0), (0, 0), (0, Btot - B))).reshape(T, L, Rp, 128)
    lbl_p = jnp.pad(jnp.transpose(labels.astype(jnp.int32), (1, 0)),
                    ((0, 0), (0, Btot - B))).reshape(T, Rp, 128)

    trans_f = trans.astype(jnp.float32)                        # (L, L)
    etrans_f = jnp.exp(trans_f)                                # hoisted EUP work
    start_f = start_trans.astype(jnp.float32).reshape(1, L)    # (1, L)
    end_f = end_trans.astype(jnp.float32).reshape(1, L)        # (1, L)

    cost = pl.CostEstimate(
        flops=int(Btot * T * 60),
        transcendentals=int(Btot * (6 * T + 4)),
        bytes_accessed=int((emis_p.size + lbl_p.size + Btot) * 4),
    )

    smem = pltpu.MemorySpace.SMEM
    out = pl.pallas_call(
        crf_nll_kernel,
        out_shape=jax.ShapeDtypeStruct((Rp, 128), jnp.float32),
        grid=grid,
        in_specs=[
            pl.BlockSpec(memory_space=smem),                        # trans  (L, L)
            pl.BlockSpec(memory_space=smem),                        # etrans (L, L)
            pl.BlockSpec(memory_space=smem),                        # start  (1, L)
            pl.BlockSpec(memory_space=smem),                        # end    (1, L)
            pl.BlockSpec((T, S, 128), lambda b: (0, b, 0)),         # labels
            pl.BlockSpec((T, L, S, 128), lambda b: (0, 0, b, 0)),   # emissions
        ],
        out_specs=pl.BlockSpec((S, 128), lambda b: (b, 0)),
        compiler_params=pltpu.CompilerParams(
            dimension_semantics=("parallel",)),
        cost_estimate=cost,
    )(trans_f, etrans_f, start_f, end_f, lbl_p, emis_p)
    return out.reshape(Btot)[:B]


def crf_nll_reference(emissions, labels, trans, start_trans, end_trans):
    """Pure-JAX reference of the same CRF negative log-likelihood."""
    B, T, L = emissions.shape
    b_idx = jnp.arange(B)
    # path score
    num = start_trans[labels[:, 0]] + emissions[b_idx, 0, labels[:, 0]]
    for t in range(1, T):
        num = num + trans[labels[:, t - 1], labels[:, t]]
        num = num + emissions[b_idx, t, labels[:, t]]
    num = num + end_trans[labels[:, T - 1]]
    # log-partition
    alpha = start_trans[None, :] + emissions[:, 0, :]
    for t in range(1, T):
        alpha = jax.scipy.special.logsumexp(
            alpha[:, :, None] + trans[None, :, :], axis=1) + emissions[:, t, :]
    denom = jax.scipy.special.logsumexp(alpha + end_trans[None, :], axis=1)
    return -(num - denom)


def _make_inputs(key, B, T, L):
    k_em, k_lbl, k_tr, k_st, k_en = jax.random.split(key, 5)
    emissions = jax.random.normal(k_em, (B, T, L), dtype=jnp.float32)
    labels = jax.random.randint(k_lbl, (B, T), 0, L, dtype=jnp.int32)
    trans = jax.random.uniform(k_tr, (L, L), minval=-0.1, maxval=0.1,
                               dtype=jnp.float32)
    start_trans = jax.random.uniform(k_st, (L,), minval=-0.1, maxval=0.1,
                                     dtype=jnp.float32)
    end_trans = jax.random.uniform(k_en, (L,), minval=-0.1, maxval=0.1,
                                   dtype=jnp.float32)
    return emissions, labels, trans, start_trans, end_trans


if __name__ == "__main__":
    key = jax.random.PRNGKey(0)

    # Case 1: module-sized toy problem (batch=2, seq=8, num_labels=3).
    B, T, L = 2, 8, 3
    em, lb, tr, st, en = _make_inputs(key, B, T, L)
    out = jax.block_until_ready(multi_task_with_crf_forward(em, lb, tr, st, en))
    ref = crf_nll_reference(em, lb, tr, st, en)
    assert out.shape == (B,)
    assert jnp.allclose(out, ref, atol=1e-3, rtol=1e-4), (out, ref)

    # Case 2: mid batch -> single sublane-packed tile (R=5, S=5, grid=(1,)).
    B2, T2 = 520, 6
    em2, lb2, tr2, st2, en2 = _make_inputs(jax.random.PRNGKey(1), B2, T2, L)
    out2 = jax.block_until_ready(multi_task_with_crf_forward(em2, lb2, tr2, st2, en2))
    ref2 = crf_nll_reference(em2, lb2, tr2, st2, en2)
    assert out2.shape == (B2,)
    assert jnp.allclose(out2, ref2, atol=1e-3, rtol=1e-4)

    # Case 3: large batch -> multi-tile grid (R=17 -> Rp=24, S=8, grid=(3,)).
    B3, T3 = 2100, 5
    em3, lb3, tr3, st3, en3 = _make_inputs(jax.random.PRNGKey(2), B3, T3, L)
    out3 = jax.block_until_ready(multi_task_with_crf_forward(em3, lb3, tr3, st3, en3))
    ref3 = crf_nll_reference(em3, lb3, tr3, st3, en3)
    assert out3.shape == (B3,)
    assert jnp.allclose(out3, ref3, atol=1e-3, rtol=1e-4)

    print("KERNEL_OK")
</pallas_src>

<mosaic_0001>
module attributes {stable_mosaic.version = 11 : i64} {
  func.func @crf_nll_kernel(%arg0: i32, %arg1: memref<3x3xf32, #tpu.memory_space<smem>>, %arg2: memref<3x3xf32, #tpu.memory_space<smem>>, %arg3: memref<1x3xf32, #tpu.memory_space<smem>>, %arg4: memref<1x3xf32, #tpu.memory_space<smem>>, %arg5: memref<8x1x128xi32, #tpu.memory_space<vmem>>, %arg6: memref<8x3x1x128xf32, #tpu.memory_space<vmem>>, %arg7: memref<1x128xf32, #tpu.memory_space<vmem>>) attributes {dimension_semantics = [#tpu.dimension_semantics<parallel>], iteration_bounds = array<i64: 1>, scalar_prefetch = 0 : i64, scratch_operands = 0 : i64, tpu.core_type = #tpu.core_type<tc>, window_params = [{transform_indices = @transform_0, window_bounds = array<i64: 3, 3>}, {transform_indices = @transform_1, window_bounds = array<i64: 3, 3>}, {transform_indices = @transform_2, window_bounds = array<i64: 1, 3>}, {transform_indices = @transform_3, window_bounds = array<i64: 1, 3>}, {transform_indices = @transform_4, window_bounds = array<i64: 8, 1, 128>}, {transform_indices = @transform_5, window_bounds = array<i64: 8, 3, 1, 128>}, {transform_indices = @transform_6, window_bounds = array<i64: 1, 128>}]} {
    %c0 = arith.constant 0 : index
    %c0_0 = arith.constant 0 : index
    %0 = memref.load %arg1[%c0, %c0_0] : memref<3x3xf32, #tpu.memory_space<smem>>
    %c0_1 = arith.constant 0 : index
    %c1 = arith.constant 1 : index
    %1 = memref.load %arg1[%c0_1, %c1] : memref<3x3xf32, #tpu.memory_space<smem>>
    %c0_2 = arith.constant 0 : index
    %c2 = arith.constant 2 : index
    %2 = memref.load %arg1[%c0_2, %c2] : memref<3x3xf32, #tpu.memory_space<smem>>
    %c1_3 = arith.constant 1 : index
    %c0_4 = arith.constant 0 : index
    %3 = memref.load %arg1[%c1_3, %c0_4] : memref<3x3xf32, #tpu.memory_space<smem>>
    %c1_5 = arith.constant 1 : index
    %c1_6 = arith.constant 1 : index
    %4 = memref.load %arg1[%c1_5, %c1_6] : memref<3x3xf32, #tpu.memory_space<smem>>
    %c1_7 = arith.constant 1 : index
    %c2_8 = arith.constant 2 : index
    %5 = memref.load %arg1[%c1_7, %c2_8] : memref<3x3xf32, #tpu.memory_space<smem>>
    %c2_9 = arith.constant 2 : index
    %c0_10 = arith.constant 0 : index
    %6 = memref.load %arg1[%c2_9, %c0_10] : memref<3x3xf32, #tpu.memory_space<smem>>
    %c2_11 = arith.constant 2 : index
    %c1_12 = arith.constant 1 : index
    %7 = memref.load %arg1[%c2_11, %c1_12] : memref<3x3xf32, #tpu.memory_space<smem>>
    %c2_13 = arith.constant 2 : index
    %c2_14 = arith.constant 2 : index
    %8 = memref.load %arg1[%c2_13, %c2_14] : memref<3x3xf32, #tpu.memory_space<smem>>
    %c0_15 = arith.constant 0 : index
    %c0_16 = arith.constant 0 : index
    %9 = memref.load %arg2[%c0_15, %c0_16] : memref<3x3xf32, #tpu.memory_space<smem>>
    %c0_17 = arith.constant 0 : index
    %c1_18 = arith.constant 1 : index
    %10 = memref.load %arg2[%c0_17, %c1_18] : memref<3x3xf32, #tpu.memory_space<smem>>
    %c0_19 = arith.constant 0 : index
    %c2_20 = arith.constant 2 : index
    %11 = memref.load %arg2[%c0_19, %c2_20] : memref<3x3xf32, #tpu.memory_space<smem>>
    %c1_21 = arith.constant 1 : index
    %c0_22 = arith.constant 0 : index
    %12 = memref.load %arg2[%c1_21, %c0_22] : memref<3x3xf32, #tpu.memory_space<smem>>
    %c1_23 = arith.constant 1 : index
    %c1_24 = arith.constant 1 : index
    %13 = memref.load %arg2[%c1_23, %c1_24] : memref<3x3xf32, #tpu.memory_space<smem>>
    %c1_25 = arith.constant 1 : index
    %c2_26 = arith.constant 2 : index
    %14 = memref.load %arg2[%c1_25, %c2_26] : memref<3x3xf32, #tpu.memory_space<smem>>
    %c2_27 = arith.constant 2 : index
    %c0_28 = arith.constant 0 : index
    %15 = memref.load %arg2[%c2_27, %c0_28] : memref<3x3xf32, #tpu.memory_space<smem>>
    %c2_29 = arith.constant 2 : index
    %c1_30 = arith.constant 1 : index
    %16 = memref.load %arg2[%c2_29, %c1_30] : memref<3x3xf32, #tpu.memory_space<smem>>
    %c2_31 = arith.constant 2 : index
    %c2_32 = arith.constant 2 : index
    %17 = memref.load %arg2[%c2_31, %c2_32] : memref<3x3xf32, #tpu.memory_space<smem>>
    %c0_33 = arith.constant 0 : index
    %c0_34 = arith.constant 0 : index
    %18 = memref.load %arg3[%c0_33, %c0_34] : memref<1x3xf32, #tpu.memory_space<smem>>
    %c0_35 = arith.constant 0 : index
    %c1_36 = arith.constant 1 : index
    %19 = memref.load %arg3[%c0_35, %c1_36] : memref<1x3xf32, #tpu.memory_space<smem>>
    %c0_37 = arith.constant 0 : index
    %c2_38 = arith.constant 2 : index
    %20 = memref.load %arg3[%c0_37, %c2_38] : memref<1x3xf32, #tpu.memory_space<smem>>
    %c0_39 = arith.constant 0 : index
    %c0_40 = arith.constant 0 : index
    %21 = memref.load %arg4[%c0_39, %c0_40] : memref<1x3xf32, #tpu.memory_space<smem>>
    %c0_41 = arith.constant 0 : index
    %c1_42 = arith.constant 1 : index
    %22 = memref.load %arg4[%c0_41, %c1_42] : memref<1x3xf32, #tpu.memory_space<smem>>
    %c0_43 = arith.constant 0 : index
    %c2_44 = arith.constant 2 : index
    %23 = memref.load %arg4[%c0_43, %c2_44] : memref<1x3xf32, #tpu.memory_space<smem>>
    %c0_45 = arith.constant 0 : index
    %c0_46 = arith.constant 0 : index
    %c0_47 = arith.constant 0 : index
    %24 = vector.load %arg5[%c0_45, %c0_46, %c0_47] : memref<8x1x128xi32, #tpu.memory_space<vmem>>, vector<1x1x128xi32>
    %25 = vector.shape_cast %24 : vector<1x1x128xi32> to vector<1x128xi32>
    %c0_48 = arith.constant 0 : index
    %c0_49 = arith.constant 0 : index
    %c0_50 = arith.constant 0 : index
    %c0_51 = arith.constant 0 : index
    %26 = vector.load %arg6[%c0_48, %c0_49, %c0_50, %c0_51] : memref<8x3x1x128xf32, #tpu.memory_space<vmem>>, vector<1x1x1x128xf32>
    %27 = vector.shape_cast %26 : vector<1x1x1x128xf32> to vector<1x128xf32>
    %28 = vector.broadcast %18 : f32 to vector<1x128xf32>
    %29 = arith.addf %28, %27 : vector<1x128xf32>
    %c0_52 = arith.constant 0 : index
    %c1_53 = arith.constant 1 : index
    %c0_54 = arith.constant 0 : index
    %c0_55 = arith.constant 0 : index
    %30 = vector.load %arg6[%c0_52, %c1_53, %c0_54, %c0_55] : memref<8x3x1x128xf32, #tpu.memory_space<vmem>>, vector<1x1x1x128xf32>
    %31 = vector.shape_cast %30 : vector<1x1x1x128xf32> to vector<1x128xf32>
    %32 = vector.broadcast %19 : f32 to vector<1x128xf32>
    %33 = arith.addf %32, %31 : vector<1x128xf32>
    %c0_56 = arith.constant 0 : index
    %c2_57 = arith.constant 2 : index
    %c0_58 = arith.constant 0 : index
    %c0_59 = arith.constant 0 : index
    %34 = vector.load %arg6[%c0_56, %c2_57, %c0_58, %c0_59] : memref<8x3x1x128xf32, #tpu.memory_space<vmem>>, vector<1x1x1x128xf32>
    %35 = vector.shape_cast %34 : vector<1x1x1x128xf32> to vector<1x128xf32>
    %36 = vector.broadcast %20 : f32 to vector<1x128xf32>
    %37 = arith.addf %36, %35 : vector<1x128xf32>
    %c1_i32 = arith.constant 1 : i32
    %38 = vector.broadcast %c1_i32 : i32 to vector<1x128xi32>
    %39 = arith.cmpi eq, %25, %38 : vector<1x128xi32>
    %40 = arith.select %39, %33, %37 : vector<1x128xi1>, vector<1x128xf32>
    %c0_i32 = arith.constant 0 : i32
    %41 = vector.broadcast %c0_i32 : i32 to vector<1x128xi32>
    %42 = arith.cmpi eq, %25, %41 : vector<1x128xi32>
    %43 = arith.select %42, %29, %40 : vector<1x128xi1>, vector<1x128xf32>
    %c1_60 = arith.constant 1 : index
    %c0_61 = arith.constant 0 : index
    %c0_62 = arith.constant 0 : index
    %44 = vector.load %arg5[%c1_60, %c0_61, %c0_62] : memref<8x1x128xi32, #tpu.memory_space<vmem>>, vector<1x1x128xi32>
    %45 = vector.shape_cast %44 : vector<1x1x128xi32> to vector<1x128xi32>
    %c1_63 = arith.constant 1 : index
    %c0_64 = arith.constant 0 : index
    %c0_65 = arith.constant 0 : index
    %c0_66 = arith.constant 0 : index
    %46 = vector.load %arg6[%c1_63, %c0_64, %c0_65, %c0_66] : memref<8x3x1x128xf32, #tpu.memory_space<vmem>>, vector<1x1x1x128xf32>
    %47 = vector.shape_cast %46 : vector<1x1x1x128xf32> to vector<1x128xf32>
    %c1_67 = arith.constant 1 : index
    %c1_68 = arith.constant 1 : index
    %c0_69 = arith.constant 0 : index
    %c0_70 = arith.constant 0 : index
    %48 = vector.load %arg6[%c1_67, %c1_68, %c0_69, %c0_70] : memref<8x3x1x128xf32, #tpu.memory_space<vmem>>, vector<1x1x1x128xf32>
    %49 = vector.shape_cast %48 : vector<1x1x1x128xf32> to vector<1x128xf32>
    %c1_71 = arith.constant 1 : index
    %c2_72 = arith.constant 2 : index
    %c0_73 = arith.constant 0 : index
    %c0_74 = arith.constant 0 : index
    %50 = vector.load %arg6[%c1_71, %c2_72, %c0_73, %c0_74] : memref<8x3x1x128xf32, #tpu.memory_space<vmem>>, vector<1x1x1x128xf32>
    %51 = vector.shape_cast %50 : vector<1x1x1x128xf32> to vector<1x128xf32>
    %c3_i32 = arith.constant 3 : i32
    %52 = vector.broadcast %c3_i32 : i32 to vector<1x128xi32>
    %53 = arith.muli %25, %52 : vector<1x128xi32>
    %54 = arith.addi %53, %45 : vector<1x128xi32>
    %c7_i32 = arith.constant 7 : i32
    %55 = vector.broadcast %c7_i32 : i32 to vector<1x128xi32>
    %56 = arith.cmpi eq, %54, %55 : vector<1x128xi32>
    %57 = vector.broadcast %7 : f32 to vector<1x128xf32>
    %58 = vector.broadcast %8 : f32 to vector<1x128xf32>
    %59 = arith.select %56, %57, %58 : vector<1x128xi1>, vector<1x128xf32>
    %c6_i32 = arith.constant 6 : i32
    %60 = vector.broadcast %c6_i32 : i32 to vector<1x128xi32>
    %61 = arith.cmpi eq, %54, %60 : vector<1x128xi32>
    %62 = vector.broadcast %6 : f32 to vector<1x128xf32>
    %63 = arith.select %61, %62, %59 : vector<1x128xi1>, vector<1x128xf32>
    %c5_i32 = arith.constant 5 : i32
    %64 = vector.broadcast %c5_i32 : i32 to vector<1x128xi32>
    %65 = arith.cmpi eq, %54, %64 : vector<1x128xi32>
    %66 = vector.broadcast %5 : f32 to vector<1x128xf32>
    %67 = arith.select %65, %66, %63 : vector<1x128xi1>, vector<1x128xf32>
    %c4_i32 = arith.constant 4 : i32
    %68 = vector.broadcast %c4_i32 : i32 to vector<1x128xi32>
    %69 = arith.cmpi eq, %54, %68 : vector<1x128xi32>
    %70 = vector.broadcast %4 : f32 to vector<1x128xf32>
    %71 = arith.select %69, %70, %67 : vector<1x128xi1>, vector<1x128xf32>
    %c3_i32_75 = arith.constant 3 : i32
    %72 = vector.broadcast %c3_i32_75 : i32 to vector<1x128xi32>
    %73 = arith.cmpi eq, %54, %72 : vector<1x128xi32>
    %74 = vector.broadcast %3 : f32 to vector<1x128xf32>
    %75 = arith.select %73, %74, %71 : vector<1x128xi1>, vector<1x128xf32>
    %c2_i32 = arith.constant 2 : i32
    %76 = vector.broadcast %c2_i32 : i32 to vector<1x128xi32>
    %77 = arith.cmpi eq, %54, %76 : vector<1x128xi32>
    %78 = vector.broadcast %2 : f32 to vector<1x128xf32>
    %79 = arith.select %77, %78, %75 : vector<1x128xi1>, vector<1x128xf32>
    %c1_i32_76 = arith.constant 1 : i32
    %80 = vector.broadcast %c1_i32_76 : i32 to vector<1x128xi32>
    %81 = arith.cmpi eq, %54, %80 : vector<1x128xi32>
    %82 = vector.broadcast %1 : f32 to vector<1x128xf32>
    %83 = arith.select %81, %82, %79 : vector<1x128xi1>, vector<1x128xf32>
    %c0_i32_77 = arith.constant 0 : i32
    %84 = vector.broadcast %c0_i32_77 : i32 to vector<1x128xi32>
    %85 = arith.cmpi eq, %54, %84 : vector<1x128xi32>
    %86 = vector.broadcast %0 : f32 to vector<1x128xf32>
    %87 = arith.select %85, %86, %83 : vector<1x128xi1>, vector<1x128xf32>
    %88 = arith.addf %43, %87 : vector<1x128xf32>
    %c1_i32_78 = arith.constant 1 : i32
    %89 = vector.broadcast %c1_i32_78 : i32 to vector<1x128xi32>
    %90 = arith.cmpi eq, %45, %89 : vector<1x128xi32>
    %91 = arith.select %90, %49, %51 : vector<1x128xi1>, vector<1x128xf32>
    %c0_i32_79 = arith.constant 0 : i32
    %92 = vector.broadcast %c0_i32_79 : i32 to vector<1x128xi32>
    %93 = arith.cmpi eq, %45, %92 : vector<1x128xi32>
    %94 = arith.select %93, %47, %91 : vector<1x128xi1>, vector<1x128xf32>
    %95 = arith.addf %88, %94 : vector<1x128xf32>
    %96 = arith.maximumf %29, %33 : vector<1x128xf32>
    %97 = arith.maximumf %96, %37 : vector<1x128xf32>
    %98 = arith.subf %29, %97 : vector<1x128xf32>
    %99 = math.exp %98 : vector<1x128xf32>
    %100 = arith.subf %33, %97 : vector<1x128xf32>
    %101 = math.exp %100 : vector<1x128xf32>
    %102 = arith.subf %37, %97 : vector<1x128xf32>
    %103 = math.exp %102 : vector<1x128xf32>
    %104 = vector.broadcast %9 : f32 to vector<1x128xf32>
    %105 = arith.mulf %99, %104 : vector<1x128xf32>
    %106 = vector.broadcast %12 : f32 to vector<1x128xf32>
    %107 = arith.mulf %101, %106 : vector<1x128xf32>
    %108 = vector.broadcast %15 : f32 to vector<1x128xf32>
    %109 = arith.mulf %103, %108 : vector<1x128xf32>
    %110 = arith.addf %105, %107 : vector<1x128xf32>
    %111 = arith.addf %110, %109 : vector<1x128xf32>
    %112 = math.log %111 : vector<1x128xf32>
    %113 = arith.addf %97, %112 : vector<1x128xf32>
    %114 = arith.addf %113, %47 : vector<1x128xf32>
    %115 = vector.broadcast %10 : f32 to vector<1x128xf32>
    %116 = arith.mulf %99, %115 : vector<1x128xf32>
    %117 = vector.broadcast %13 : f32 to vector<1x128xf32>
    %118 = arith.mulf %101, %117 : vector<1x128xf32>
    %119 = vector.broadcast %16 : f32 to vector<1x128xf32>
    %120 = arith.mulf %103, %119 : vector<1x128xf32>
    %121 = arith.addf %116, %118 : vector<1x128xf32>
    %122 = arith.addf %121, %120 : vector<1x128xf32>
    %123 = math.log %122 : vector<1x128xf32>
    %124 = arith.addf %97, %123 : vector<1x128xf32>
    %125 = arith.addf %124, %49 : vector<1x128xf32>
    %126 = vector.broadcast %11 : f32 to vector<1x128xf32>
    %127 = arith.mulf %99, %126 : vector<1x128xf32>
    %128 = vector.broadcast %14 : f32 to vector<1x128xf32>
    %129 = arith.mulf %101, %128 : vector<1x128xf32>
    %130 = vector.broadcast %17 : f32 to vector<1x128xf32>
    %131 = arith.mulf %103, %130 : vector<1x128xf32>
    %132 = arith.addf %127, %129 : vector<1x128xf32>
    %133 = arith.addf %132, %131 : vector<1x128xf32>
    %134 = math.log %133 : vector<1x128xf32>
    %135 = arith.addf %97, %134 : vector<1x128xf32>
    %136 = arith.addf %135, %51 : vector<1x128xf32>
    %c2_80 = arith.constant 2 : index
    %c0_81 = arith.constant 0 : index
    %c0_82 = arith.constant 0 : index
    %137 = vector.load %arg5[%c2_80, %c0_81, %c0_82] : memref<8x1x128xi32, #tpu.memory_space<vmem>>, vector<1x1x128xi32>
    %138 = vector.shape_cast %137 : vector<1x1x128xi32> to vector<1x128xi32>
    %c2_83 = arith.constant 2 : index
    %c0_84 = arith.constant 0 : index
    %c0_85 = arith.constant 0 : index
    %c0_86 = arith.constant 0 : index
    %139 = vector.load %arg6[%c2_83, %c0_84, %c0_85, %c0_86] : memref<8x3x1x128xf32, #tpu.memory_space<vmem>>, vector<1x1x1x128xf32>
    %140 = vector.shape_cast %139 : vector<1x1x1x128xf32> to vector<1x128xf32>
    %c2_87 = arith.constant 2 : index
    %c1_88 = arith.constant 1 : index
    %c0_89 = arith.constant 0 : index
    %c0_90 = arith.constant 0 : index
    %141 = vector.load %arg6[%c2_87, %c1_88, %c0_89, %c0_90] : memref<8x3x1x128xf32, #tpu.memory_space<vmem>>, vector<1x1x1x128xf32>
    %142 = vector.shape_cast %141 : vector<1x1x1x128xf32> to vector<1x128xf32>
    %c2_91 = arith.constant 2 : index
    %c2_92 = arith.constant 2 : index
    %c0_93 = arith.constant 0 : index
    %c0_94 = arith.constant 0 : index
    %143 = vector.load %arg6[%c2_91, %c2_92, %c0_93, %c0_94] : memref<8x3x1x128xf32, #tpu.memory_space<vmem>>, vector<1x1x1x128xf32>
    %144 = vector.shape_cast %143 : vector<1x1x1x128xf32> to vector<1x128xf32>
    %c3_i32_95 = arith.constant 3 : i32
    %145 = vector.broadcast %c3_i32_95 : i32 to vector<1x128xi32>
    %146 = arith.muli %45, %145 : vector<1x128xi32>
    %147 = arith.addi %146, %138 : vector<1x128xi32>
    %c7_i32_96 = arith.constant 7 : i32
    %148 = vector.broadcast %c7_i32_96 : i32 to vector<1x128xi32>
    %149 = arith.cmpi eq, %147, %148 : vector<1x128xi32>
    %150 = vector.broadcast %7 : f32 to vector<1x128xf32>
    %151 = vector.broadcast %8 : f32 to vector<1x128xf32>
    %152 = arith.select %149, %150, %151 : vector<1x128xi1>, vector<1x128xf32>
    %c6_i32_97 = arith.constant 6 : i32
    %153 = vector.broadcast %c6_i32_97 : i32 to vector<1x128xi32>
    %154 = arith.cmpi eq, %147, %153 : vector<1x128xi32>
    %155 = vector.broadcast %6 : f32 to vector<1x128xf32>
    %156 = arith.select %154, %155, %152 : vector<1x128xi1>, vector<1x128xf32>
    %c5_i32_98 = arith.constant 5 : i32
    %157 = vector.broadcast %c5_i32_98 : i32 to vector<1x128xi32>
    %158 = arith.cmpi eq, %147, %157 : vector<1x128xi32>
    %159 = vector.broadcast %5 : f32 to vector<1x128xf32>
    %160 = arith.select %158, %159, %156 : vector<1x128xi1>, vector<1x128xf32>
    %c4_i32_99 = arith.constant 4 : i32
    %161 = vector.broadcast %c4_i32_99 : i32 to vector<1x128xi32>
    %162 = arith.cmpi eq, %147, %161 : vector<1x128xi32>
    %163 = vector.broadcast %4 : f32 to vector<1x128xf32>
    %164 = arith.select %162, %163, %160 : vector<1x128xi1>, vector<1x128xf32>
    %c3_i32_100 = arith.constant 3 : i32
    %165 = vector.broadcast %c3_i32_100 : i32 to vector<1x128xi32>
    %166 = arith.cmpi eq, %147, %165 : vector<1x128xi32>
    %167 = vector.broadcast %3 : f32 to vector<1x128xf32>
    %168 = arith.select %166, %167, %164 : vector<1x128xi1>, vector<1x128xf32>
    %c2_i32_101 = arith.constant 2 : i32
    %169 = vector.broadcast %c2_i32_101 : i32 to vector<1x128xi32>
    %170 = arith.cmpi eq, %147, %169 : vector<1x128xi32>
    %171 = vector.broadcast %2 : f32 to vector<1x128xf32>
    %172 = arith.select %170, %171, %168 : vector<1x128xi1>, vector<1x128xf32>
    %c1_i32_102 = arith.constant 1 : i32
    %173 = vector.broadcast %c1_i32_102 : i32 to vector<1x128xi32>
    %174 = arith.cmpi eq, %147, %173 : vector<1x128xi32>
    %175 = vector.broadcast %1 : f32 to vector<1x128xf32>
    %176 = arith.select %174, %175, %172 : vector<1x128xi1>, vector<1x128xf32>
    %c0_i32_103 = arith.constant 0 : i32
    %177 = vector.broadcast %c0_i32_103 : i32 to vector<1x128xi32>
    %178 = arith.cmpi eq, %147, %177 : vector<1x128xi32>
    %179 = vector.broadcast %0 : f32 to vector<1x128xf32>
    %180 = arith.select %178, %179, %176 : vector<1x128xi1>, vector<1x128xf32>
    %181 = arith.addf %95, %180 : vector<1x128xf32>
    %c1_i32_104 = arith.constant 1 : i32
    %182 = vector.broadcast %c1_i32_104 : i32 to vector<1x128xi32>
    %183 = arith.cmpi eq, %138, %182 : vector<1x128xi32>
    %184 = arith.select %183, %142, %144 : vector<1x128xi1>, vector<1x128xf32>
    %c0_i32_105 = arith.constant 0 : i32
    %185 = vector.broadcast %c0_i32_105 : i32 to vector<1x128xi32>
    %186 = arith.cmpi eq, %138, %185 : vector<1x128xi32>
    %187 = arith.select %186, %140, %184 : vector<1x128xi1>, vector<1x128xf32>
    %188 = arith.addf %181, %187 : vector<1x128xf32>
    %189 = arith.maximumf %114, %125 : vector<1x128xf32>
    %190 = arith.maximumf %189, %136 : vector<1x128xf32>
    %191 = arith.subf %114, %190 : vector<1x128xf32>
    %192 = math.exp %191 : vector<1x128xf32>
    %193 = arith.subf %125, %190 : vector<1x128xf32>
    %194 = math.exp %193 : vector<1x128xf32>
    %195 = arith.subf %136, %190 : vector<1x128xf32>
    %196 = math.exp %195 : vector<1x128xf32>
    %197 = vector.broadcast %9 : f32 to vector<1x128xf32>
    %198 = arith.mulf %192, %197 : vector<1x128xf32>
    %199 = vector.broadcast %12 : f32 to vector<1x128xf32>
    %200 = arith.mulf %194, %199 : vector<1x128xf32>
    %201 = vector.broadcast %15 : f32 to vector<1x128xf32>
    %202 = arith.mulf %196, %201 : vector<1x128xf32>
    %203 = arith.addf %198, %200 : vector<1x128xf32>
    %204 = arith.addf %203, %202 : vector<1x128xf32>
    %205 = math.log %204 : vector<1x128xf32>
    %206 = arith.addf %190, %205 : vector<1x128xf32>
    %207 = arith.addf %206, %140 : vector<1x128xf32>
    %208 = vector.broadcast %10 : f32 to vector<1x128xf32>
    %209 = arith.mulf %192, %208 : vector<1x128xf32>
    %210 = vector.broadcast %13 : f32 to vector<1x128xf32>
    %211 = arith.mulf %194, %210 : vector<1x128xf32>
    %212 = vector.broadcast %16 : f32 to vector<1x128xf32>
    %213 = arith.mulf %196, %212 : vector<1x128xf32>
    %214 = arith.addf %209, %211 : vector<1x128xf32>
    %215 = arith.addf %214, %213 : vector<1x128xf32>
    %216 = math.log %215 : vector<1x128xf32>
    %217 = arith.addf %190, %216 : vector<1x128xf32>
    %218 = arith.addf %217, %142 : vector<1x128xf32>
    %219 = vector.broadcast %11 : f32 to vector<1x128xf32>
    %220 = arith.mulf %192, %219 : vector<1x128xf32>
    %221 = vector.broadcast %14 : f32 to vector<1x128xf32>
    %222 = arith.mulf %194, %221 : vector<1x128xf32>
    %223 = vector.broadcast %17 : f32 to vector<1x128xf32>
    %224 = arith.mulf %196, %223 : vector<1x128xf32>
    %225 = arith.addf %220, %222 : vector<1x128xf32>
    %226 = arith.addf %225, %224 : vector<1x128xf32>
    %227 = math.log %226 : vector<1x128xf32>
    %228 = arith.addf %190, %227 : vector<1x128xf32>
    %229 = arith.addf %228, %144 : vector<1x128xf32>
    %c3 = arith.constant 3 : index
    %c0_106 = arith.constant 0 : index
    %c0_107 = arith.constant 0 : index
    %230 = vector.load %arg5[%c3, %c0_106, %c0_107] : memref<8x1x128xi32, #tpu.memory_space<vmem>>, vector<1x1x128xi32>
    %231 = vector.shape_cast %230 : vector<1x1x128xi32> to vector<1x128xi32>
    %c3_108 = arith.constant 3 : index
    %c0_109 = arith.constant 0 : index
    %c0_110 = arith.constant 0 : index
    %c0_111 = arith.constant 0 : index
    %232 = vector.load %arg6[%c3_108, %c0_109, %c0_110, %c0_111] : memref<8x3x1x128xf32, #tpu.memory_space<vmem>>, vector<1x1x1x128xf32>
    %233 = vector.shape_cast %232 : vector<1x1x1x128xf32> to vector<1x128xf32>
    %c3_112 = arith.constant 3 : index
    %c1_113 = arith.constant 1 : index
    %c0_114 = arith.constant 0 : index
    %c0_115 = arith.constant 0 : index
    %234 = vector.load %arg6[%c3_112, %c1_113, %c0_114, %c0_115] : memref<8x3x1x128xf32, #tpu.memory_space<vmem>>, vector<1x1x1x128xf32>
    %235 = vector.shape_cast %234 : vector<1x1x1x128xf32> to vector<1x128xf32>
    %c3_116 = arith.constant 3 : index
    %c2_117 = arith.constant 2 : index
    %c0_118 = arith.constant 0 : index
    %c0_119 = arith.constant 0 : index
    %236 = vector.load %arg6[%c3_116, %c2_117, %c0_118, %c0_119] : memref<8x3x1x128xf32, #tpu.memory_space<vmem>>, vector<1x1x1x128xf32>
    %237 = vector.shape_cast %236 : vector<1x1x1x128xf32> to vector<1x128xf32>
    %c3_i32_120 = arith.constant 3 : i32
    %238 = vector.broadcast %c3_i32_120 : i32 to vector<1x128xi32>
    %239 = arith.muli %138, %238 : vector<1x128xi32>
    %240 = arith.addi %239, %231 : vector<1x128xi32>
    %c7_i32_121 = arith.constant 7 : i32
    %241 = vector.broadcast %c7_i32_121 : i32 to vector<1x128xi32>
    %242 = arith.cmpi eq, %240, %241 : vector<1x128xi32>
    %243 = vector.broadcast %7 : f32 to vector<1x128xf32>
    %244 = vector.broadcast %8 : f32 to vector<1x128xf32>
    %245 = arith.select %242, %243, %244 : vector<1x128xi1>, vector<1x128xf32>
    %c6_i32_122 = arith.constant 6 : i32
    %246 = vector.broadcast %c6_i32_122 : i32 to vector<1x128xi32>
    %247 = arith.cmpi eq, %240, %246 : vector<1x128xi32>
    %248 = vector.broadcast %6 : f32 to vector<1x128xf32>
    %249 = arith.select %247, %248, %245 : vector<1x128xi1>, vector<1x128xf32>
    %c5_i32_123 = arith.constant 5 : i32
    %250 = vector.broadcast %c5_i32_123 : i32 to vector<1x128xi32>
    %251 = arith.cmpi eq, %240, %250 : vector<1x128xi32>
    %252 = vector.broadcast %5 : f32 to vector<1x128xf32>
    %253 = arith.select %251, %252, %249 : vector<1x128xi1>, vector<1x128xf32>
    %c4_i32_124 = arith.constant 4 : i32
    %254 = vector.broadcast %c4_i32_124 : i32 to vector<1x128xi32>
    %255 = arith.cmpi eq, %240, %254 : vector<1x128xi32>
    %256 = vector.broadcast %4 : f32 to vector<1x128xf32>
    %257 = arith.select %255, %256, %253 : vector<1x128xi1>, vector<1x128xf32>
    %c3_i32_125 = arith.constant 3 : i32
    %258 = vector.broadcast %c3_i32_125 : i32 to vector<1x128xi32>
    %259 = arith.cmpi eq, %240, %258 : vector<1x128xi32>
    %260 = vector.broadcast %3 : f32 to vector<1x128xf32>
    %261 = arith.select %259, %260, %257 : vector<1x128xi1>, vector<1x128xf32>
    %c2_i32_126 = arith.constant 2 : i32
    %262 = vector.broadcast %c2_i32_126 : i32 to vector<1x128xi32>
    %263 = arith.cmpi eq, %240, %262 : vector<1x128xi32>
    %264 = vector.broadcast %2 : f32 to vector<1x128xf32>
    %265 = arith.select %263, %264, %261 : vector<1x128xi1>, vector<1x128xf32>
    %c1_i32_127 = arith.constant 1 : i32
    %266 = vector.broadcast %c1_i32_127 : i32 to vector<1x128xi32>
    %267 = arith.cmpi eq, %240, %266 : vector<1x128xi32>
    %268 = vector.broadcast %1 : f32 to vector<1x128xf32>
    %269 = arith.select %267, %268, %265 : vector<1x128xi1>, vector<1x128xf32>
    %c0_i32_128 = arith.constant 0 : i32
    %270 = vector.broadcast %c0_i32_128 : i32 to vector<1x128xi32>
    %271 = arith.cmpi eq, %240, %270 : vector<1x128xi32>
    %272 = vector.broadcast %0 : f32 to vector<1x128xf32>
    %273 = arith.select %271, %272, %269 : vector<1x128xi1>, vector<1x128xf32>
    %274 = arith.addf %188, %273 : vector<1x128xf32>
    %c1_i32_129 = arith.constant 1 : i32
    %275 = vector.broadcast %c1_i32_129 : i32 to vector<1x128xi32>
    %276 = arith.cmpi eq, %231, %275 : vector<1x128xi32>
    %277 = arith.select %276, %235, %237 : vector<1x128xi1>, vector<1x128xf32>
    %c0_i32_130 = arith.constant 0 : i32
    %278 = vector.broadcast %c0_i32_130 : i32 to vector<1x128xi32>
    %279 = arith.cmpi eq, %231, %278 : vector<1x128xi32>
    %280 = arith.select %279, %233, %277 : vector<1x128xi1>, vector<1x128xf32>
    %281 = arith.addf %274, %280 : vector<1x128xf32>
    %282 = arith.maximumf %207, %218 : vector<1x128xf32>
    %283 = arith.maximumf %282, %229 : vector<1x128xf32>
    %284 = arith.subf %207, %283 : vector<1x128xf32>
    %285 = math.exp %284 : vector<1x128xf32>
    %286 = arith.subf %218, %283 : vector<1x128xf32>
    %287 = math.exp %286 : vector<1x128xf32>
    %288 = arith.subf %229, %283 : vector<1x128xf32>
    %289 = math.exp %288 : vector<1x128xf32>
    %290 = vector.broadcast %9 : f32 to vector<1x128xf32>
    %291 = arith.mulf %285, %290 : vector<1x128xf32>
    %292 = vector.broadcast %12 : f32 to vector<1x128xf32>
    %293 = arith.mulf %287, %292 : vector<1x128xf32>
    %294 = vector.broadcast %15 : f32 to vector<1x128xf32>
    %295 = arith.mulf %289, %294 : vector<1x128xf32>
    %296 = arith.addf %291, %293 : vector<1x128xf32>
    %297 = arith.addf %296, %295 : vector<1x128xf32>
    %298 = math.log %297 : vector<1x128xf32>
    %299 = arith.addf %283, %298 : vector<1x128xf32>
    %300 = arith.addf %299, %233 : vector<1x128xf32>
    %301 = vector.broadcast %10 : f32 to vector<1x128xf32>
    %302 = arith.mulf %285, %301 : vector<1x128xf32>
    %303 = vector.broadcast %13 : f32 to vector<1x128xf32>
    %304 = arith.mulf %287, %303 : vector<1x128xf32>
    %305 = vector.broadcast %16 : f32 to vector<1x128xf32>
    %306 = arith.mulf %289, %305 : vector<1x128xf32>
    %307 = arith.addf %302, %304 : vector<1x128xf32>
    %308 = arith.addf %307, %306 : vector<1x128xf32>
    %309 = math.log %308 : vector<1x128xf32>
    %310 = arith.addf %283, %309 : vector<1x128xf32>
    %311 = arith.addf %310, %235 : vector<1x128xf32>
    %312 = vector.broadcast %11 : f32 to vector<1x128xf32>
    %313 = arith.mulf %285, %312 : vector<1x128xf32>
    %314 = vector.broadcast %14 : f32 to vector<1x128xf32>
    %315 = arith.mulf %287, %314 : vector<1x128xf32>
    %316 = vector.broadcast %17 : f32 to vector<1x128xf32>
    %317 = arith.mulf %289, %316 : vector<1x128xf32>
    %318 = arith.addf %313, %315 : vector<1x128xf32>
    %319 = arith.addf %318, %317 : vector<1x128xf32>
    %320 = math.log %319 : vector<1x128xf32>
    %321 = arith.addf %283, %320 : vector<1x128xf32>
    %322 = arith.addf %321, %237 : vector<1x128xf32>
    %c4 = arith.constant 4 : index
    %c0_131 = arith.constant 0 : index
    %c0_132 = arith.constant 0 : index
    %323 = vector.load %arg5[%c4, %c0_131, %c0_132] : memref<8x1x128xi32, #tpu.memory_space<vmem>>, vector<1x1x128xi32>
    %324 = vector.shape_cast %323 : vector<1x1x128xi32> to vector<1x128xi32>
    %c4_133 = arith.constant 4 : index
    %c0_134 = arith.constant 0 : index
    %c0_135 = arith.constant 0 : index
    %c0_136 = arith.constant 0 : index
    %325 = vector.load %arg6[%c4_133, %c0_134, %c0_135, %c0_136] : memref<8x3x1x128xf32, #tpu.memory_space<vmem>>, vector<1x1x1x128xf32>
    %326 = vector.shape_cast %325 : vector<1x1x1x128xf32> to vector<1x128xf32>
    %c4_137 = arith.constant 4 : index
    %c1_138 = arith.constant 1 : index
    %c0_139 = arith.constant 0 : index
    %c0_140 = arith.constant 0 : index
    %327 = vector.load %arg6[%c4_137, %c1_138, %c0_139, %c0_140] : memref<8x3x1x128xf32, #tpu.memory_space<vmem>>, vector<1x1x1x128xf32>
    %328 = vector.shape_cast %327 : vector<1x1x1x128xf32> to vector<1x128xf32>
    %c4_141 = arith.constant 4 : index
    %c2_142 = arith.constant 2 : index
    %c0_143 = arith.constant 0 : index
    %c0_144 = arith.constant 0 : index
    %329 = vector.load %arg6[%c4_141, %c2_142, %c0_143, %c0_144] : memref<8x3x1x128xf32, #tpu.memory_space<vmem>>, vector<1x1x1x128xf32>
    %330 = vector.shape_cast %329 : vector<1x1x1x128xf32> to vector<1x128xf32>
    %c3_i32_145 = arith.constant 3 : i32
    %331 = vector.broadcast %c3_i32_145 : i32 to vector<1x128xi32>
    %332 = arith.muli %231, %331 : vector<1x128xi32>
    %333 = arith.addi %332, %324 : vector<1x128xi32>
    %c7_i32_146 = arith.constant 7 : i32
    %334 = vector.broadcast %c7_i32_146 : i32 to vector<1x128xi32>
    %335 = arith.cmpi eq, %333, %334 : vector<1x128xi32>
    %336 = vector.broadcast %7 : f32 to vector<1x128xf32>
    %337 = vector.broadcast %8 : f32 to vector<1x128xf32>
    %338 = arith.select %335, %336, %337 : vector<1x128xi1>, vector<1x128xf32>
    %c6_i32_147 = arith.constant 6 : i32
    %339 = vector.broadcast %c6_i32_147 : i32 to vector<1x128xi32>
    %340 = arith.cmpi eq, %333, %339 : vector<1x128xi32>
    %341 = vector.broadcast %6 : f32 to vector<1x128xf32>
    %342 = arith.select %340, %341, %338 : vector<1x128xi1>, vector<1x128xf32>
    %c5_i32_148 = arith.constant 5 : i32
    %343 = vector.broadcast %c5_i32_148 : i32 to vector<1x128xi32>
    %344 = arith.cmpi eq, %333, %343 : vector<1x128xi32>
    %345 = vector.broadcast %5 : f32 to vector<1x128xf32>
    %346 = arith.select %344, %345, %342 : vector<1x128xi1>, vector<1x128xf32>
    %c4_i32_149 = arith.constant 4 : i32
    %347 = vector.broadcast %c4_i32_149 : i32 to vector<1x128xi32>
    %348 = arith.cmpi eq, %333, %347 : vector<1x128xi32>
    %349 = vector.broadcast %4 : f32 to vector<1x128xf32>
    %350 = arith.select %348, %349, %346 : vector<1x128xi1>, vector<1x128xf32>
    %c3_i32_150 = arith.constant 3 : i32
    %351 = vector.broadcast %c3_i32_150 : i32 to vector<1x128xi32>
    %352 = arith.cmpi eq, %333, %351 : vector<1x128xi32>
    %353 = vector.broadcast %3 : f32 to vector<1x128xf32>
    %354 = arith.select %352, %353, %350 : vector<1x128xi1>, vector<1x128xf32>
    %c2_i32_151 = arith.constant 2 : i32
    %355 = vector.broadcast %c2_i32_151 : i32 to vector<1x128xi32>
    %356 = arith.cmpi eq, %333, %355 : vector<1x128xi32>
    %357 = vector.broadcast %2 : f32 to vector<1x128xf32>
    %358 = arith.select %356, %357, %354 : vector<1x128xi1>, vector<1x128xf32>
    %c1_i32_152 = arith.constant 1 : i32
    %359 = vector.broadcast %c1_i32_152 : i32 to vector<1x128xi32>
    %360 = arith.cmpi eq, %333, %359 : vector<1x128xi32>
    %361 = vector.broadcast %1 : f32 to vector<1x128xf32>
    %362 = arith.select %360, %361, %358 : vector<1x128xi1>, vector<1x128xf32>
    %c0_i32_153 = arith.constant 0 : i32
    %363 = vector.broadcast %c0_i32_153 : i32 to vector<1x128xi32>
    %364 = arith.cmpi eq, %333, %363 : vector<1x128xi32>
    %365 = vector.broadcast %0 : f32 to vector<1x128xf32>
    %366 = arith.select %364, %365, %362 : vector<1x128xi1>, vector<1x128xf32>
    %367 = arith.addf %281, %366 : vector<1x128xf32>
    %c1_i32_154 = arith.constant 1 : i32
    %368 = vector.broadcast %c1_i32_154 : i32 to vector<1x128xi32>
    %369 = arith.cmpi eq, %324, %368 : vector<1x128xi32>
    %370 = arith.select %369, %328, %330 : vector<1x128xi1>, vector<1x128xf32>
    %c0_i32_155 = arith.constant 0 : i32
    %371 = vector.broadcast %c0_i32_155 : i32 to vector<1x128xi32>
    %372 = arith.cmpi eq, %324, %371 : vector<1x128xi32>
    %373 = arith.select %372, %326, %370 : vector<1x128xi1>, vector<1x128xf32>
    %374 = arith.addf %367, %373 : vector<1x128xf32>
    %375 = arith.maximumf %300, %311 : vector<1x128xf32>
    %376 = arith.maximumf %375, %322 : vector<1x128xf32>
    %377 = arith.subf %300, %376 : vector<1x128xf32>
    %378 = math.exp %377 : vector<1x128xf32>
    %379 = arith.subf %311, %376 : vector<1x128xf32>
    %380 = math.exp %379 : vector<1x128xf32>
    %381 = arith.subf %322, %376 : vector<1x128xf32>
    %382 = math.exp %381 : vector<1x128xf32>
    %383 = vector.broadcast %9 : f32 to vector<1x128xf32>
    %384 = arith.mulf %378, %383 : vector<1x128xf32>
    %385 = vector.broadcast %12 : f32 to vector<1x128xf32>
    %386 = arith.mulf %380, %385 : vector<1x128xf32>
    %387 = vector.broadcast %15 : f32 to vector<1x128xf32>
    %388 = arith.mulf %382, %387 : vector<1x128xf32>
    %389 = arith.addf %384, %386 : vector<1x128xf32>
    %390 = arith.addf %389, %388 : vector<1x128xf32>
    %391 = math.log %390 : vector<1x128xf32>
    %392 = arith.addf %376, %391 : vector<1x128xf32>
    %393 = arith.addf %392, %326 : vector<1x128xf32>
    %394 = vector.broadcast %10 : f32 to vector<1x128xf32>
    %395 = arith.mulf %378, %394 : vector<1x128xf32>
    %396 = vector.broadcast %13 : f32 to vector<1x128xf32>
    %397 = arith.mulf %380, %396 : vector<1x128xf32>
    %398 = vector.broadcast %16 : f32 to vector<1x128xf32>
    %399 = arith.mulf %382, %398 : vector<1x128xf32>
    %400 = arith.addf %395, %397 : vector<1x128xf32>
    %401 = arith.addf %400, %399 : vector<1x128xf32>
    %402 = math.log %401 : vector<1x128xf32>
    %403 = arith.addf %376, %402 : vector<1x128xf32>
    %404 = arith.addf %403, %328 : vector<1x128xf32>
    %405 = vector.broadcast %11 : f32 to vector<1x128xf32>
    %406 = arith.mulf %378, %405 : vector<1x128xf32>
    %407 = vector.broadcast %14 : f32 to vector<1x128xf32>
    %408 = arith.mulf %380, %407 : vector<1x128xf32>
    %409 = vector.broadcast %17 : f32 to vector<1x128xf32>
    %410 = arith.mulf %382, %409 : vector<1x128xf32>
    %411 = arith.addf %406, %408 : vector<1x128xf32>
    %412 = arith.addf %411, %410 : vector<1x128xf32>
    %413 = math.log %412 : vector<1x128xf32>
    %414 = arith.addf %376, %413 : vector<1x128xf32>
    %415 = arith.addf %414, %330 : vector<1x128xf32>
    %c5 = arith.constant 5 : index
    %c0_156 = arith.constant 0 : index
    %c0_157 = arith.constant 0 : index
    %416 = vector.load %arg5[%c5, %c0_156, %c0_157] : memref<8x1x128xi32, #tpu.memory_space<vmem>>, vector<1x1x128xi32>
    %417 = vector.shape_cast %416 : vector<1x1x128xi32> to vector<1x128xi32>
    %c5_158 = arith.constant 5 : index
    %c0_159 = arith.constant 0 : index
    %c0_160 = arith.constant 0 : index
    %c0_161 = arith.constant 0 : index
    %418 = vector.load %arg6[%c5_158, %c0_159, %c0_160, %c0_161] : memref<8x3x1x128xf32, #tpu.memory_space<vmem>>, vector<1x1x1x128xf32>
    %419 = vector.shape_cast %418 : vector<1x1x1x128xf32> to vector<1x128xf32>
    %c5_162 = arith.constant 5 : index
    %c1_163 = arith.constant 1 : index
    %c0_164 = arith.constant 0 : index
    %c0_165 = arith.constant 0 : index
    %420 = vector.load %arg6[%c5_162, %c1_163, %c0_164, %c0_165] : memref<8x3x1x128xf32, #tpu.memory_space<vmem>>, vector<1x1x1x128xf32>
    %421 = vector.shape_cast %420 : vector<1x1x1x128xf32> to vector<1x128xf32>
    %c5_166 = arith.constant 5 : index
    %c2_167 = arith.constant 2 : index
    %c0_168 = arith.constant 0 : index
    %c0_169 = arith.constant 0 : index
    %422 = vector.load %arg6[%c5_166, %c2_167, %c0_168, %c0_169] : memref<8x3x1x128xf32, #tpu.memory_space<vmem>>, vector<1x1x1x128xf32>
    %423 = vector.shape_cast %422 : vector<1x1x1x128xf32> to vector<1x128xf32>
    %c3_i32_170 = arith.constant 3 : i32
    %424 = vector.broadcast %c3_i32_170 : i32 to vector<1x128xi32>
    %425 = arith.muli %324, %424 : vector<1x128xi32>
    %426 = arith.addi %425, %417 : vector<1x128xi32>
    %c7_i32_171 = arith.constant 7 : i32
    %427 = vector.broadcast %c7_i32_171 : i32 to vector<1x128xi32>
    %428 = arith.cmpi eq, %426, %427 : vector<1x128xi32>
    %429 = vector.broadcast %7 : f32 to vector<1x128xf32>
    %430 = vector.broadcast %8 : f32 to vector<1x128xf32>
    %431 = arith.select %428, %429, %430 : vector<1x128xi1>, vector<1x128xf32>
    %c6_i32_172 = arith.constant 6 : i32
    %432 = vector.broadcast %c6_i32_172 : i32 to vector<1x128xi32>
    %433 = arith.cmpi eq, %426, %432 : vector<1x128xi32>
    %434 = vector.broadcast %6 : f32 to vector<1x128xf32>
    %435 = arith.select %433, %434, %431 : vector<1x128xi1>, vector<1x128xf32>
    %c5_i32_173 = arith.constant 5 : i32
    %436 = vector.broadcast %c5_i32_173 : i32 to vector<1x128xi32>
    %437 = arith.cmpi eq, %426, %436 : vector<1x128xi32>
    %438 = vector.broadcast %5 : f32 to vector<1x128xf32>
    %439 = arith.select %437, %438, %435 : vector<1x128xi1>, vector<1x128xf32>
    %c4_i32_174 = arith.constant 4 : i32
    %440 = vector.broadcast %c4_i32_174 : i32 to vector<1x128xi32>
    %441 = arith.cmpi eq, %426, %440 : vector<1x128xi32>
    %442 = vector.broadcast %4 : f32 to vector<1x128xf32>
    %443 = arith.select %441, %442, %439 : vector<1x128xi1>, vector<1x128xf32>
    %c3_i32_175 = arith.constant 3 : i32
    %444 = vector.broadcast %c3_i32_175 : i32 to vector<1x128xi32>
    %445 = arith.cmpi eq, %426, %444 : vector<1x128xi32>
    %446 = vector.broadcast %3 : f32 to vector<1x128xf32>
    %447 = arith.select %445, %446, %443 : vector<1x128xi1>, vector<1x128xf32>
    %c2_i32_176 = arith.constant 2 : i32
    %448 = vector.broadcast %c2_i32_176 : i32 to vector<1x128xi32>
    %449 = arith.cmpi eq, %426, %448 : vector<1x128xi32>
    %450 = vector.broadcast %2 : f32 to vector<1x128xf32>
    %451 = arith.select %449, %450, %447 : vector<1x128xi1>, vector<1x128xf32>
    %c1_i32_177 = arith.constant 1 : i32
    %452 = vector.broadcast %c1_i32_177 : i32 to vector<1x128xi32>
    %453 = arith.cmpi eq, %426, %452 : vector<1x128xi32>
    %454 = vector.broadcast %1 : f32 to vector<1x128xf32>
    %455 = arith.select %453, %454, %451 : vector<1x128xi1>, vector<1x128xf32>
    %c0_i32_178 = arith.constant 0 : i32
    %456 = vector.broadcast %c0_i32_178 : i32 to vector<1x128xi32>
    %457 = arith.cmpi eq, %426, %456 : vector<1x128xi32>
    %458 = vector.broadcast %0 : f32 to vector<1x128xf32>
    %459 = arith.select %457, %458, %455 : vector<1x128xi1>, vector<1x128xf32>
    %460 = arith.addf %374, %459 : vector<1x128xf32>
    %c1_i32_179 = arith.constant 1 : i32
    %461 = vector.broadcast %c1_i32_179 : i32 to vector<1x128xi32>
    %462 = arith.cmpi eq, %417, %461 : vector<1x128xi32>
    %463 = arith.select %462, %421, %423 : vector<1x128xi1>, vector<1x128xf32>
    %c0_i32_180 = arith.constant 0 : i32
    %464 = vector.broadcast %c0_i32_180 : i32 to vector<1x128xi32>
    %465 = arith.cmpi eq, %417, %464 : vector<1x128xi32>
    %466 = arith.select %465, %419, %463 : vector<1x128xi1>, vector<1x128xf32>
    %467 = arith.addf %460, %466 : vector<1x128xf32>
    %468 = arith.maximumf %393, %404 : vector<1x128xf32>
    %469 = arith.maximumf %468, %415 : vector<1x128xf32>
    %470 = arith.subf %393, %469 : vector<1x128xf32>
    %471 = math.exp %470 : vector<1x128xf32>
    %472 = arith.subf %404, %469 : vector<1x128xf32>
    %473 = math.exp %472 : vector<1x128xf32>
    %474 = arith.subf %415, %469 : vector<1x128xf32>
    %475 = math.exp %474 : vector<1x128xf32>
    %476 = vector.broadcast %9 : f32 to vector<1x128xf32>
    %477 = arith.mulf %471, %476 : vector<1x128xf32>
    %478 = vector.broadcast %12 : f32 to vector<1x128xf32>
    %479 = arith.mulf %473, %478 : vector<1x128xf32>
    %480 = vector.broadcast %15 : f32 to vector<1x128xf32>
    %481 = arith.mulf %475, %480 : vector<1x128xf32>
    %482 = arith.addf %477, %479 : vector<1x128xf32>
    %483 = arith.addf %482, %481 : vector<1x128xf32>
    %484 = math.log %483 : vector<1x128xf32>
    %485 = arith.addf %469, %484 : vector<1x128xf32>
    %486 = arith.addf %485, %419 : vector<1x128xf32>
    %487 = vector.broadcast %10 : f32 to vector<1x128xf32>
    %488 = arith.mulf %471, %487 : vector<1x128xf32>
    %489 = vector.broadcast %13 : f32 to vector<1x128xf32>
    %490 = arith.mulf %473, %489 : vector<1x128xf32>
    %491 = vector.broadcast %16 : f32 to vector<1x128xf32>
    %492 = arith.mulf %475, %491 : vector<1x128xf32>
    %493 = arith.addf %488, %490 : vector<1x128xf32>
    %494 = arith.addf %493, %492 : vector<1x128xf32>
    %495 = math.log %494 : vector<1x128xf32>
    %496 = arith.addf %469, %495 : vector<1x128xf32>
    %497 = arith.addf %496, %421 : vector<1x128xf32>
    %498 = vector.broadcast %11 : f32 to vector<1x128xf32>
    %499 = arith.mulf %471, %498 : vector<1x128xf32>
    %500 = vector.broadcast %14 : f32 to vector<1x128xf32>
    %501 = arith.mulf %473, %500 : vector<1x128xf32>
    %502 = vector.broadcast %17 : f32 to vector<1x128xf32>
    %503 = arith.mulf %475, %502 : vector<1x128xf32>
    %504 = arith.addf %499, %501 : vector<1x128xf32>
    %505 = arith.addf %504, %503 : vector<1x128xf32>
    %506 = math.log %505 : vector<1x128xf32>
    %507 = arith.addf %469, %506 : vector<1x128xf32>
    %508 = arith.addf %507, %423 : vector<1x128xf32>
    %c6 = arith.constant 6 : index
    %c0_181 = arith.constant 0 : index
    %c0_182 = arith.constant 0 : index
    %509 = vector.load %arg5[%c6, %c0_181, %c0_182] : memref<8x1x128xi32, #tpu.memory_space<vmem>>, vector<1x1x128xi32>
    %510 = vector.shape_cast %509 : vector<1x1x128xi32> to vector<1x128xi32>
    %c6_183 = arith.constant 6 : index
    %c0_184 = arith.constant 0 : index
    %c0_185 = arith.constant 0 : index
    %c0_186 = arith.constant 0 : index
    %511 = vector.load %arg6[%c6_183, %c0_184, %c0_185, %c0_186] : memref<8x3x1x128xf32, #tpu.memory_space<vmem>>, vector<1x1x1x128xf32>
    %512 = vector.shape_cast %511 : vector<1x1x1x128xf32> to vector<1x128xf32>
    %c6_187 = arith.constant 6 : index
    %c1_188 = arith.constant 1 : index
    %c0_189 = arith.constant 0 : index
    %c0_190 = arith.constant 0 : index
    %513 = vector.load %arg6[%c6_187, %c1_188, %c0_189, %c0_190] : memref<8x3x1x128xf32, #tpu.memory_space<vmem>>, vector<1x1x1x128xf32>
    %514 = vector.shape_cast %513 : vector<1x1x1x128xf32> to vector<1x128xf32>
    %c6_191 = arith.constant 6 : index
    %c2_192 = arith.constant 2 : index
    %c0_193 = arith.constant 0 : index
    %c0_194 = arith.constant 0 : index
    %515 = vector.load %arg6[%c6_191, %c2_192, %c0_193, %c0_194] : memref<8x3x1x128xf32, #tpu.memory_space<vmem>>, vector<1x1x1x128xf32>
    %516 = vector.shape_cast %515 : vector<1x1x1x128xf32> to vector<1x128xf32>
    %c3_i32_195 = arith.constant 3 : i32
    %517 = vector.broadcast %c3_i32_195 : i32 to vector<1x128xi32>
    %518 = arith.muli %417, %517 : vector<1x128xi32>
    %519 = arith.addi %518, %510 : vector<1x128xi32>
    %c7_i32_196 = arith.constant 7 : i32
    %520 = vector.broadcast %c7_i32_196 : i32 to vector<1x128xi32>
    %521 = arith.cmpi eq, %519, %520 : vector<1x128xi32>
    %522 = vector.broadcast %7 : f32 to vector<1x128xf32>
    %523 = vector.broadcast %8 : f32 to vector<1x128xf32>
    %524 = arith.select %521, %522, %523 : vector<1x128xi1>, vector<1x128xf32>
    %c6_i32_197 = arith.constant 6 : i32
    %525 = vector.broadcast %c6_i32_197 : i32 to vector<1x128xi32>
    %526 = arith.cmpi eq, %519, %525 : vector<1x128xi32>
    %527 = vector.broadcast %6 : f32 to vector<1x128xf32>
    %528 = arith.select %526, %527, %524 : vector<1x128xi1>, vector<1x128xf32>
    %c5_i32_198 = arith.constant 5 : i32
    %529 = vector.broadcast %c5_i32_198 : i32 to vector<1x128xi32>
    %530 = arith.cmpi eq, %519, %529 : vector<1x128xi32>
    %531 = vector.broadcast %5 : f32 to vector<1x128xf32>
    %532 = arith.select %530, %531, %528 : vector<1x128xi1>, vector<1x128xf32>
    %c4_i32_199 = arith.constant 4 : i32
    %533 = vector.broadcast %c4_i32_199 : i32 to vector<1x128xi32>
    %534 = arith.cmpi eq, %519, %533 : vector<1x128xi32>
    %535 = vector.broadcast %4 : f32 to vector<1x128xf32>
    %536 = arith.select %534, %535, %532 : vector<1x128xi1>, vector<1x128xf32>
    %c3_i32_200 = arith.constant 3 : i32
    %537 = vector.broadcast %c3_i32_200 : i32 to vector<1x128xi32>
    %538 = arith.cmpi eq, %519, %537 : vector<1x128xi32>
    %539 = vector.broadcast %3 : f32 to vector<1x128xf32>
    %540 = arith.select %538, %539, %536 : vector<1x128xi1>, vector<1x128xf32>
    %c2_i32_201 = arith.constant 2 : i32
    %541 = vector.broadcast %c2_i32_201 : i32 to vector<1x128xi32>
    %542 = arith.cmpi eq, %519, %541 : vector<1x128xi32>
    %543 = vector.broadcast %2 : f32 to vector<1x128xf32>
    %544 = arith.select %542, %543, %540 : vector<1x128xi1>, vector<1x128xf32>
    %c1_i32_202 = arith.constant 1 : i32
    %545 = vector.broadcast %c1_i32_202 : i32 to vector<1x128xi32>
    %546 = arith.cmpi eq, %519, %545 : vector<1x128xi32>
    %547 = vector.broadcast %1 : f32 to vector<1x128xf32>
    %548 = arith.select %546, %547, %544 : vector<1x128xi1>, vector<1x128xf32>
    %c0_i32_203 = arith.constant 0 : i32
    %549 = vector.broadcast %c0_i32_203 : i32 to vector<1x128xi32>
    %550 = arith.cmpi eq, %519, %549 : vector<1x128xi32>
    %551 = vector.broadcast %0 : f32 to vector<1x128xf32>
    %552 = arith.select %550, %551, %548 : vector<1x128xi1>, vector<1x128xf32>
    %553 = arith.addf %467, %552 : vector<1x128xf32>
    %c1_i32_204 = arith.constant 1 : i32
    %554 = vector.broadcast %c1_i32_204 : i32 to vector<1x128xi32>
    %555 = arith.cmpi eq, %510, %554 : vector<1x128xi32>
    %556 = arith.select %555, %514, %516 : vector<1x128xi1>, vector<1x128xf32>
    %c0_i32_205 = arith.constant 0 : i32
    %557 = vector.broadcast %c0_i32_205 : i32 to vector<1x128xi32>
    %558 = arith.cmpi eq, %510, %557 : vector<1x128xi32>
    %559 = arith.select %558, %512, %556 : vector<1x128xi1>, vector<1x128xf32>
    %560 = arith.addf %553, %559 : vector<1x128xf32>
    %561 = arith.maximumf %486, %497 : vector<1x128xf32>
    %562 = arith.maximumf %561, %508 : vector<1x128xf32>
    %563 = arith.subf %486, %562 : vector<1x128xf32>
    %564 = math.exp %563 : vector<1x128xf32>
    %565 = arith.subf %497, %562 : vector<1x128xf32>
    %566 = math.exp %565 : vector<1x128xf32>
    %567 = arith.subf %508, %562 : vector<1x128xf32>
    %568 = math.exp %567 : vector<1x128xf32>
    %569 = vector.broadcast %9 : f32 to vector<1x128xf32>
    %570 = arith.mulf %564, %569 : vector<1x128xf32>
    %571 = vector.broadcast %12 : f32 to vector<1x128xf32>
    %572 = arith.mulf %566, %571 : vector<1x128xf32>
    %573 = vector.broadcast %15 : f32 to vector<1x128xf32>
    %574 = arith.mulf %568, %573 : vector<1x128xf32>
    %575 = arith.addf %570, %572 : vector<1x128xf32>
    %576 = arith.addf %575, %574 : vector<1x128xf32>
    %577 = math.log %576 : vector<1x128xf32>
    %578 = arith.addf %562, %577 : vector<1x128xf32>
    %579 = arith.addf %578, %512 : vector<1x128xf32>
    %580 = vector.broadcast %10 : f32 to vector<1x128xf32>
    %581 = arith.mulf %564, %580 : vector<1x128xf32>
    %582 = vector.broadcast %13 : f32 to vector<1x128xf32>
    %583 = arith.mulf %566, %582 : vector<1x128xf32>
    %584 = vector.broadcast %16 : f32 to vector<1x128xf32>
    %585 = arith.mulf %568, %584 : vector<1x128xf32>
    %586 = arith.addf %581, %583 : vector<1x128xf32>
    %587 = arith.addf %586, %585 : vector<1x128xf32>
    %588 = math.log %587 : vector<1x128xf32>
    %589 = arith.addf %562, %588 : vector<1x128xf32>
    %590 = arith.addf %589, %514 : vector<1x128xf32>
    %591 = vector.broadcast %11 : f32 to vector<1x128xf32>
    %592 = arith.mulf %564, %591 : vector<1x128xf32>
    %593 = vector.broadcast %14 : f32 to vector<1x128xf32>
    %594 = arith.mulf %566, %593 : vector<1x128xf32>
    %595 = vector.broadcast %17 : f32 to vector<1x128xf32>
    %596 = arith.mulf %568, %595 : vector<1x128xf32>
    %597 = arith.addf %592, %594 : vector<1x128xf32>
    %598 = arith.addf %597, %596 : vector<1x128xf32>
    %599 = math.log %598 : vector<1x128xf32>
    %600 = arith.addf %562, %599 : vector<1x128xf32>
    %601 = arith.addf %600, %516 : vector<1x128xf32>
    %c7 = arith.constant 7 : index
    %c0_206 = arith.constant 0 : index
    %c0_207 = arith.constant 0 : index
    %602 = vector.load %arg5[%c7, %c0_206, %c0_207] : memref<8x1x128xi32, #tpu.memory_space<vmem>>, vector<1x1x128xi32>
    %603 = vector.shape_cast %602 : vector<1x1x128xi32> to vector<1x128xi32>
    %c7_208 = arith.constant 7 : index
    %c0_209 = arith.constant 0 : index
    %c0_210 = arith.constant 0 : index
    %c0_211 = arith.constant 0 : index
    %604 = vector.load %arg6[%c7_208, %c0_209, %c0_210, %c0_211] : memref<8x3x1x128xf32, #tpu.memory_space<vmem>>, vector<1x1x1x128xf32>
    %605 = vector.shape_cast %604 : vector<1x1x1x128xf32> to vector<1x128xf32>
    %c7_212 = arith.constant 7 : index
    %c1_213 = arith.constant 1 : index
    %c0_214 = arith.constant 0 : index
    %c0_215 = arith.constant 0 : index
    %606 = vector.load %arg6[%c7_212, %c1_213, %c0_214, %c0_215] : memref<8x3x1x128xf32, #tpu.memory_space<vmem>>, vector<1x1x1x128xf32>
    %607 = vector.shape_cast %606 : vector<1x1x1x128xf32> to vector<1x128xf32>
    %c7_216 = arith.constant 7 : index
    %c2_217 = arith.constant 2 : index
    %c0_218 = arith.constant 0 : index
    %c0_219 = arith.constant 0 : index
    %608 = vector.load %arg6[%c7_216, %c2_217, %c0_218, %c0_219] : memref<8x3x1x128xf32, #tpu.memory_space<vmem>>, vector<1x1x1x128xf32>
    %609 = vector.shape_cast %608 : vector<1x1x1x128xf32> to vector<1x128xf32>
    %c3_i32_220 = arith.constant 3 : i32
    %610 = vector.broadcast %c3_i32_220 : i32 to vector<1x128xi32>
    %611 = arith.muli %510, %610 : vector<1x128xi32>
    %612 = arith.addi %611, %603 : vector<1x128xi32>
    %c7_i32_221 = arith.constant 7 : i32
    %613 = vector.broadcast %c7_i32_221 : i32 to vector<1x128xi32>
    %614 = arith.cmpi eq, %612, %613 : vector<1x128xi32>
    %615 = vector.broadcast %7 : f32 to vector<1x128xf32>
    %616 = vector.broadcast %8 : f32 to vector<1x128xf32>
    %617 = arith.select %614, %615, %616 : vector<1x128xi1>, vector<1x128xf32>
    %c6_i32_222 = arith.constant 6 : i32
    %618 = vector.broadcast %c6_i32_222 : i32 to vector<1x128xi32>
    %619 = arith.cmpi eq, %612, %618 : vector<1x128xi32>
    %620 = vector.broadcast %6 : f32 to vector<1x128xf32>
    %621 = arith.select %619, %620, %617 : vector<1x128xi1>, vector<1x128xf32>
    %c5_i32_223 = arith.constant 5 : i32
    %622 = vector.broadcast %c5_i32_223 : i32 to vector<1x128xi32>
    %623 = arith.cmpi eq, %612, %622 : vector<1x128xi32>
    %624 = vector.broadcast %5 : f32 to vector<1x128xf32>
    %625 = arith.select %623, %624, %621 : vector<1x128xi1>, vector<1x128xf32>
    %c4_i32_224 = arith.constant 4 : i32
    %626 = vector.broadcast %c4_i32_224 : i32 to vector<1x128xi32>
    %627 = arith.cmpi eq, %612, %626 : vector<1x128xi32>
    %628 = vector.broadcast %4 : f32 to vector<1x128xf32>
    %629 = arith.select %627, %628, %625 : vector<1x128xi1>, vector<1x128xf32>
    %c3_i32_225 = arith.constant 3 : i32
    %630 = vector.broadcast %c3_i32_225 : i32 to vector<1x128xi32>
    %631 = arith.cmpi eq, %612, %630 : vector<1x128xi32>
    %632 = vector.broadcast %3 : f32 to vector<1x128xf32>
    %633 = arith.select %631, %632, %629 : vector<1x128xi1>, vector<1x128xf32>
    %c2_i32_226 = arith.constant 2 : i32
    %634 = vector.broadcast %c2_i32_226 : i32 to vector<1x128xi32>
    %635 = arith.cmpi eq, %612, %634 : vector<1x128xi32>
    %636 = vector.broadcast %2 : f32 to vector<1x128xf32>
    %637 = arith.select %635, %636, %633 : vector<1x128xi1>, vector<1x128xf32>
    %c1_i32_227 = arith.constant 1 : i32
    %638 = vector.broadcast %c1_i32_227 : i32 to vector<1x128xi32>
    %639 = arith.cmpi eq, %612, %638 : vector<1x128xi32>
    %640 = vector.broadcast %1 : f32 to vector<1x128xf32>
    %641 = arith.select %639, %640, %637 : vector<1x128xi1>, vector<1x128xf32>
    %c0_i32_228 = arith.constant 0 : i32
    %642 = vector.broadcast %c0_i32_228 : i32 to vector<1x128xi32>
    %643 = arith.cmpi eq, %612, %642 : vector<1x128xi32>
    %644 = vector.broadcast %0 : f32 to vector<1x128xf32>
    %645 = arith.select %643, %644, %641 : vector<1x128xi1>, vector<1x128xf32>
    %646 = arith.addf %560, %645 : vector<1x128xf32>
    %c1_i32_229 = arith.constant 1 : i32
    %647 = vector.broadcast %c1_i32_229 : i32 to vector<1x128xi32>
    %648 = arith.cmpi eq, %603, %647 : vector<1x128xi32>
    %649 = arith.select %648, %607, %609 : vector<1x128xi1>, vector<1x128xf32>
    %c0_i32_230 = arith.constant 0 : i32
    %650 = vector.broadcast %c0_i32_230 : i32 to vector<1x128xi32>
    %651 = arith.cmpi eq, %603, %650 : vector<1x128xi32>
    %652 = arith.select %651, %605, %649 : vector<1x128xi1>, vector<1x128xf32>
    %653 = arith.addf %646, %652 : vector<1x128xf32>
    %654 = arith.maximumf %579, %590 : vector<1x128xf32>
    %655 = arith.maximumf %654, %601 : vector<1x128xf32>
    %656 = arith.subf %579, %655 : vector<1x128xf32>
    %657 = math.exp %656 : vector<1x128xf32>
    %658 = arith.subf %590, %655 : vector<1x128xf32>
    %659 = math.exp %658 : vector<1x128xf32>
    %660 = arith.subf %601, %655 : vector<1x128xf32>
    %661 = math.exp %660 : vector<1x128xf32>
    %662 = vector.broadcast %9 : f32 to vector<1x128xf32>
    %663 = arith.mulf %657, %662 : vector<1x128xf32>
    %664 = vector.broadcast %12 : f32 to vector<1x128xf32>
    %665 = arith.mulf %659, %664 : vector<1x128xf32>
    %666 = vector.broadcast %15 : f32 to vector<1x128xf32>
    %667 = arith.mulf %661, %666 : vector<1x128xf32>
    %668 = arith.addf %663, %665 : vector<1x128xf32>
    %669 = arith.addf %668, %667 : vector<1x128xf32>
    %670 = math.log %669 : vector<1x128xf32>
    %671 = arith.addf %655, %670 : vector<1x128xf32>
    %672 = arith.addf %671, %605 : vector<1x128xf32>
    %673 = vector.broadcast %10 : f32 to vector<1x128xf32>
    %674 = arith.mulf %657, %673 : vector<1x128xf32>
    %675 = vector.broadcast %13 : f32 to vector<1x128xf32>
    %676 = arith.mulf %659, %675 : vector<1x128xf32>
    %677 = vector.broadcast %16 : f32 to vector<1x128xf32>
    %678 = arith.mulf %661, %677 : vector<1x128xf32>
    %679 = arith.addf %674, %676 : vector<1x128xf32>
    %680 = arith.addf %679, %678 : vector<1x128xf32>
    %681 = math.log %680 : vector<1x128xf32>
    %682 = arith.addf %655, %681 : vector<1x128xf32>
    %683 = arith.addf %682, %607 : vector<1x128xf32>
    %684 = vector.broadcast %11 : f32 to vector<1x128xf32>
    %685 = arith.mulf %657, %684 : vector<1x128xf32>
    %686 = vector.broadcast %14 : f32 to vector<1x128xf32>
    %687 = arith.mulf %659, %686 : vector<1x128xf32>
    %688 = vector.broadcast %17 : f32 to vector<1x128xf32>
    %689 = arith.mulf %661, %688 : vector<1x128xf32>
    %690 = arith.addf %685, %687 : vector<1x128xf32>
    %691 = arith.addf %690, %689 : vector<1x128xf32>
    %692 = math.log %691 : vector<1x128xf32>
    %693 = arith.addf %655, %692 : vector<1x128xf32>
    %694 = arith.addf %693, %609 : vector<1x128xf32>
    %c1_i32_231 = arith.constant 1 : i32
    %695 = vector.broadcast %c1_i32_231 : i32 to vector<1x128xi32>
    %696 = arith.cmpi eq, %603, %695 : vector<1x128xi32>
    %697 = vector.broadcast %22 : f32 to vector<1x128xf32>
    %698 = vector.broadcast %23 : f32 to vector<1x128xf32>
    %699 = arith.select %696, %697, %698 : vector<1x128xi1>, vector<1x128xf32>
    %c0_i32_232 = arith.constant 0 : i32
    %700 = vector.broadcast %c0_i32_232 : i32 to vector<1x128xi32>
    %701 = arith.cmpi eq, %603, %700 : vector<1x128xi32>
    %702 = vector.broadcast %21 : f32 to vector<1x128xf32>
    %703 = arith.select %701, %702, %699 : vector<1x128xi1>, vector<1x128xf32>
    %704 = arith.addf %653, %703 : vector<1x128xf32>
    %705 = vector.broadcast %21 : f32 to vector<1x128xf32>
    %706 = arith.addf %672, %705 : vector<1x128xf32>
    %707 = vector.broadcast %22 : f32 to vector<1x128xf32>
    %708 = arith.addf %683, %707 : vector<1x128xf32>
    %709 = vector.broadcast %23 : f32 to vector<1x128xf32>
    %710 = arith.addf %694, %709 : vector<1x128xf32>
    %711 = arith.maximumf %706, %708 : vector<1x128xf32>
    %712 = arith.maximumf %711, %710 : vector<1x128xf32>
    %713 = arith.subf %706, %712 : vector<1x128xf32>
    %714 = math.exp %713 : vector<1x128xf32>
    %715 = arith.subf %708, %712 : vector<1x128xf32>
    %716 = math.exp %715 : vector<1x128xf32>
    %717 = arith.subf %710, %712 : vector<1x128xf32>
    %718 = math.exp %717 : vector<1x128xf32>
    %719 = arith.addf %714, %716 : vector<1x128xf32>
    %720 = arith.addf %719, %718 : vector<1x128xf32>
    %721 = math.log %720 : vector<1x128xf32>
    %722 = arith.addf %712, %721 : vector<1x128xf32>
    %723 = arith.subf %722, %704 : vector<1x128xf32>
    %c0_233 = arith.constant 0 : index
    %c0_234 = arith.constant 0 : index
    %724 = vector.load %arg7[%c0_233, %c0_234] : memref<1x128xf32, #tpu.memory_space<vmem>>, vector<1x128xf32>
    tpu.vector_store %arg7[%c0_233, %c0_234], %723 {strides = array<i32>} : memref<1x128xf32, #tpu.memory_space<vmem>>, vector<1x128xf32>,
    return
  }
  func.func @transform_0(%arg0: i32) -> (i32, i32) {
    %c0_i32 = arith.constant 0 : i32
    %c0_i32_0 = arith.constant 0 : i32
    %c0_i32_1 = arith.constant 0 : i32
    return %c0_i32, %c0_i32_0 : i32, i32
  }
  func.func @transform_1(%arg0: i32) -> (i32, i32) {
    %c0_i32 = arith.constant 0 : i32
    %c0_i32_0 = arith.constant 0 : i32
    %c0_i32_1 = arith.constant 0 : i32
    return %c0_i32, %c0_i32_0 : i32, i32
  }
  func.func @transform_2(%arg0: i32) -> (i32, i32) {
    %c0_i32 = arith.constant 0 : i32
    %c0_i32_0 = arith.constant 0 : i32
    %c0_i32_1 = arith.constant 0 : i32
    return %c0_i32, %c0_i32_0 : i32, i32
  }
  func.func @transform_3(%arg0: i32) -> (i32, i32) {
    %c0_i32 = arith.constant 0 : i32
    %c0_i32_0 = arith.constant 0 : i32
    %c0_i32_1 = arith.constant 0 : i32
    return %c0_i32, %c0_i32_0 : i32, i32
  }
  func.func @transform_4(%arg0: i32) -> (i32, i32, i32) {
    %c0_i32 = arith.constant 0 : i32
    %c0_i32_0 = arith.constant 0 : i32
    %c0_i32_1 = arith.constant 0 : i32
    return %c0_i32, %arg0, %c0_i32_0 : i32, i32, i32
  }
  func.func @transform_5(%arg0: i32) -> (i32, i32, i32, i32) {
    %c0_i32 = arith.constant 0 : i32
    %c0_i32_0 = arith.constant 0 : i32
    %c0_i32_1 = arith.constant 0 : i32
    %c0_i32_2 = arith.constant 0 : i32
    return %c0_i32, %c0_i32_0, %arg0, %c0_i32_1 : i32, i32, i32, i32
  }
  func.func @transform_6(%arg0: i32) -> (i32, i32) {
    %c0_i32 = arith.constant 0 : i32
    %c0_i32_0 = arith.constant 0 : i32
    return %arg0, %c0_i32 : i32, i32
  }
}

</mosaic_0001>

<bundles_post_ra>
// kernel: tpu_custom_call.1
= control target key start
LH: loop header
LB: loop body
LE: loop exit
PB: predicated region body
PF: predicated region fallthrough
CT: control target
= control target key end

     0   :  { %11 = vsyncpa [#allocation5], 0  ;;  %s1449_s0 = inlined_call_operand.hbm [shape: f32[3,3], index: 0, kind: input, shape index: {}]   ;;  %s1450_s1 = inlined_call_operand.hbm [shape: f32[3,3], index: 1, kind: input, shape index: {}]   ;;  %s1451_s2 = inlined_call_operand.vmem [shape: f32[1,3], index: 2, kind: input, shape index: {}]   ;;  %s1452_s3 = inlined_call_operand.vmem [shape: f32[1,3], index: 3, kind: input, shape index: {}]   ;;  %s1453_s4 = inlined_call_operand.vmem [shape: s32[8,1,128], index: 4, kind: input, shape index: {}]   ;;  %s1454_s5 = inlined_call_operand.hbm [shape: f32[8,3,1,128], index: 5, kind: input, shape index: {}]   ;;  %s1455_s6 = inlined_call_operand.hbm [shape: f32[1,128], index: 6, kind: output, shape index: {}]  }
   0x1   :  { %12 = vsyncpa [#allocation8], 0 }
   0x2   :  { %13 = vsyncpa [#allocation6], 0 }
   0x3   :  { %14 = vsyncpa [#allocation11], 0 }
   0x4   :  { %15 = vsyncpa [#allocation3], 0 }
   0x5   :  { %16 = vsyncpa [#allocation4], 0  ;;  %s804_s23 = scalar_lea.hbm %s1449_s0, 64 }
   0x6   :  { %p805_p0 = scmp.ne.s32.totalorder %s1449_s0, %s804_s23  ;;  %p808_p1 = scmp.lt.u32.totalorder %s804_s23, %s1449_s0 }
   0x8   :  { %p810_p2 = pnand %p808_p1, %p805_p0 }
   0xa   :  { %813 = shalt.err (!%p810_p2)
}
   0xb   :  { %s904_s28 = smov [#allocation2]   ;;  %s814_s9 = scalar_lea.hbm %s1450_s1, 64 }
   0xc   :  { %24 = dma.hbm_to_smem %s1449_s0, 64, %s904_s28, [#allocation5]  }
   0xd   :  { %p815_p3 = scmp.ne.s32.totalorder %s1450_s1, %s814_s9  ;;  %p818_p4 = scmp.lt.u32.totalorder %s814_s9, %s1450_s1 }
   0xf   :  { %p820_p5 = pnand %p818_p4, %p815_p3 }
  0x11   :  { %823 = shalt.err (!%p820_p5)
}
  0x12   :  { %s905_s14 = smov [#allocation7]   ;;  %s39_s18 = sshll.u32 %s1451_s2, 4  ;;  %s40_s18 = int_to_ptr.vmem [resolvable:$true] %s39_s18 }
  0x13   :  { %32 = dma.hbm_to_smem %s1450_s1, 64, %s905_s14, [#allocation8]  }
  0x14   :  { %s49_s21 = sshll.u32 %s1452_s3, 4  ;;  %s824_s22 = scalar_lea.vmem %s40_s18, 16  ;;  %s50_s21 = int_to_ptr.vmem [resolvable:$true] %s49_s21 }
  0x15   :  { %p825_p6 = scmp.ne.s32.totalorder %s40_s18, %s824_s22  ;;  %p829_p7 = scmp.lt.s32.totalorder %s40_s18, %s40_s18 }
  0x16   :  { %p830_p8 = scmp.lt.s32.totalorder %s824_s22, %s824_s22 }
  0x18   :  { %p831_p9 = por %p830_p8, %p829_p7 }
  0x1a   :  { %p832_p10 = pnand %p831_p9, %p825_p6 }
  0x1c   :  { %835 = shalt.err (!%p832_p10)
}
  0x1d   :  { %s906_s23 = smov [#allocation9]   ;;  %s836_s1 = scalar_lea.vmem %s50_s21, 16 }
  0x1e   :  { %42 = dma.vmem_to_smem %s40_s18, 16, %s906_s23, [#allocation6]  }
  0x1f   :  { %p837_p11 = scmp.ne.s32.totalorder %s50_s21, %s836_s1  ;;  %p841_p12 = scmp.lt.s32.totalorder %s50_s21, %s50_s21 }
  0x20   :  { %p842_p13 = scmp.lt.s32.totalorder %s836_s1, %s836_s1 }
  0x22   :  { %p843_p0 = por %p842_p13, %p841_p12 }
  0x24   :  { %p844_p1 = pnand %p843_p0, %p837_p11 }
  0x26   :  { %847 = shalt.err (!%p844_p1)
}
  0x27   :  { %s907_s2 = smov [#allocation10]   ;;  %s908_s3 = smov [#allocation12]  }
  0x28   :  { %52 = dma.vmem_to_smem %s50_s21, 16, %s907_s2, [#allocation11]  }
  0x29   :  { %s60_s24 = sshll.u32 %s908_s3, 4  ;;  %s848_s27 = scalar_lea.hbm %s1454_s5, 384  ;;  %s61_s24 = int_to_ptr.vmem [resolvable:$true] %s60_s24 }
  0x2a   :  { %p849_p2 = scmp.ne.s32.totalorder %s1454_s5, %s848_s27  ;;  %p852_p3 = scmp.lt.u32.totalorder %s848_s27, %s1454_s5 }
  0x2c   :  { %p854_p4 = pnand %p852_p3, %p849_p2 }
  0x2e   :  { %857 = shalt.err (!%p854_p4)
}
  0x2f   :  { %s858_s8 = scalar_lea.vmem %s61_s24, 384  ;;  %p863_p6 = scmp.lt.s32.totalorder %s61_s24, %s61_s24 }
  0x30   :  { %p859_p5 = scmp.ne.s32.totalorder %s61_s24, %s858_s8  ;;  %p864_p7 = scmp.lt.s32.totalorder %s858_s8, %s858_s8 }
  0x32   :  { %p865_p8 = por %p864_p7, %p863_p6 }
  0x34   :  { %p866_p9 = pnand %p865_p8, %p859_p5 }
  0x36   :  { %869 = shalt.err (!%p866_p9)
}
  0x37   :  { %s909_s9 = smov 16   ;;  %s910_s10 = smov 1  }
  0x38   :  { %66 = dma.hbm_to_vmem [thread:$0]  %s1454_s5, 384, %s61_s24, [#allocation3], %s909_s9, %s909_s9, %s910_s10  }
  0x39   :  { %892 = dma.done.wait [#allocation5], 64  }
  0x3a   :  { %893 = vsyncadd [#allocation5], 4294967232 }
  0x3b   :  { %894 = dma.done.wait [#allocation8], 64  }
  0x3c   :  { %895 = vsyncadd [#allocation8], 4294967232 }
  0x3d   :  { %896 = dma.done.wait [#allocation6], 16  }
  0x3e   :  { %897 = vsyncadd [#allocation6], 4294967280 }
  0x3f   :  { %898 = dma.done.wait [#allocation11], 16  }
  0x40   :  { %899 = vsyncadd [#allocation11], 4294967280 }
  0x41   :  { %900 = dma.done.wait [#allocation3], 384  }
  0x42   :  { %901 = vsyncadd [#allocation3], 4294966912 }
  0x43   :  { %82 = sfence }
  0x44   :  { %s989_s13 = sld [smem:[#allocation2 + $0x2]]  ;;  %s679_s14 = sld [smem:[#allocation2 + $0x80]]  ;;  %v107_v0 = vld [vmem:[%s1453_s4] sm:$0x1]  ;;  %v1003_v1 = vld [vmem:[%s1453_s4 + $0x1] sm:$0x1] }
  0x45   :  { %s683_s15 = sld [smem:[#allocation2 + $0x101]]  ;;  %s682_s16 = sld [smem:[#allocation2 + $0x100]]  ;;  %v1005_v2 = vld [vmem:[#allocation12 + $0x4] sm:$0x1]  ;;  %v1007_v3 = vld [vmem:[#allocation12 + $0x5] sm:$0x1] }
  0x46   :  { %s684_s0 = sld [smem:[#allocation2 + $0x102]]  ;;  %s991_s18 = sld [smem:[#allocation2 + $0x81]]  ;;  %v131_v4 = vmul.u32 3, %v107_v0  ;;  %vm159_vm0 = vcmp.eq.s32.totalorder %v1003_v1, 1  ;;  %vm119_vm1 = vcmp.eq.s32.totalorder %v107_v0, 1  ;;  %vm161_vm2 = vcmp.eq.s32.totalorder %v1003_v1, 0 }
  0x47   :  { %s681_s17 = sld [smem:[#allocation2 + $0x82]]  ;;  %s996_s20 = sld [smem:[#allocation2]]  ;;  %v1016_v5 = vld [vmem:[#allocation12 + $0x3] sm:$0x1]  ;;  %v160_v6 = vsel %vm159_vm0, %v1005_v2, %v1007_v3  ;;  %v108_v11 = vld [vmem:[#allocation12] sm:$0x1] }
  0x48   :  { %s998_s21 = sld [smem:[#allocation2 + $0x1]]  ;;  %s1009_s1 = sld [smem:[#allocation9]]  ;;  %v132_v7 = vadd.s32 %v1003_v1, %v131_v4  ;;  %v162_v10 = vsel %vm161_vm2, %v1016_v5, %v160_v6  ;;  %vm121_vm3 = vcmp.eq.s32.totalorder %v107_v0, 0  ;;  %v112_v15 = vld [vmem:[#allocation12 + $0x1] sm:$0x1] }
  0x49   :  { %s1011_s2 = sld [smem:[#allocation9 + $0x1]]  ;;  %s1014_s3 = sld [smem:[#allocation9 + $0x2]]  ;;  %v116_v17 = vld [vmem:[#allocation12 + $0x2] sm:$0x1] }
  0x4a   :  { %v1029_v13 = vstv %s679_s14  ;;  %v1032_v14 = vstv %s989_s13  ;;  %vm133_vm4 = vcmp.eq.s32.totalorder %v132_v7, 7  ;;  %vm137_vm5 = vcmp.eq.s32.totalorder %v132_v7, 6  ;;  %s92_s24 = sld [smem:[#allocation7]]  ;;  %s685_s25 = sld [smem:[#allocation7 + $0x1]] }
  0x4b   :  { %v1022_v8 = vstv %s683_s15  ;;  %v1027_v12 = vstv %s682_s16  ;;  %vm140_vm6 = vcmp.eq.s32.totalorder %v132_v7, 5  ;;  %vm143_vm7 = vcmp.eq.s32.totalorder %v132_v7, 4  ;;  %s686_s26 = sld [smem:[#allocation7 + $0x2]]  ;;  %s687_s27 = sld [smem:[#allocation7 + $0x80]] }
  0x4c   :  { %v1024_v9 = vstv %s684_s0  ;;  %v1039_v19 = vstv %s991_s18  ;;  %vm146_vm8 = vcmp.eq.s32.totalorder %v132_v7, 3  ;;  %vm149_vm9 = vcmp.eq.s32.totalorder %v132_v7, 2  ;;  %s688_s28 = sld [smem:[#allocation7 + $0x81]]  ;;  %s689_s29 = sld [smem:[#allocation7 + $0x82]] }
  0x4d   :  { %v1034_v16 = vstv %s681_s17  ;;  %v136_v18 = vsel %vm133_vm4, %v1022_v8, %v1024_v9  ;;  %vm152_vm10 = vcmp.eq.s32.totalorder %v132_v7, 1  ;;  %vm155_vm11 = vcmp.eq.s32.totalorder %v132_v7, 0  ;;  %s690_s30 = sld [smem:[#allocation7 + $0x100]]  ;;  %s691_s7 = sld [smem:[#allocation7 + $0x101]] }
  0x4e   :  { %v109_v20 = vstv %s1009_s1  ;;  %v139_v22 = vsel %vm137_vm5, %v1027_v12, %v136_v18  ;;  %v1048_v29 = vstv %s998_s21  ;;  %v1052_v31 = vstv %s996_s20  ;;  %s692_s8 = sld [smem:[#allocation7 + $0x102]]  ;;  %s1290_s18 = sld [smem:[#allocation10]] }
  0x4f   :  { %v113_v21 = vstv %s1011_s2  ;;  %v110_v23 = vadd.f32 %v109_v20, %v108_v11  ;;  %v117_v25 = vstv %s1014_s3  ;;  %v142_v26 = vsel %vm140_vm6, %v1034_v16, %v139_v22  ;;  %s1297_s5 = sld [smem:[#allocation10 + $0x1]]  ;;  %s1304_s19 = sld [smem:[#allocation10 + $0x2]] }
  0x50   :  { %v114_v24 = vadd.f32 %v113_v21, %v112_v15  ;;  %v118_v27 = vadd.f32 %v117_v25, %v116_v17  ;;  %v145_v28 = vsel %vm143_vm7, %v1039_v19, %v142_v26  ;;  %v1061_v47 = vstv %s92_s24 }
  0x51   :  { %v148_v30 = vsel %vm146_vm8, %v1029_v13, %v145_v28  ;;  %v1063_v48 = vstv %s685_s25  ;;  %v1065_v49 = vstv %s686_s26  ;;  %v1067_v50 = vstv %s687_s27 }
  0x52   :  { %v164_v32 = vmax.f32 %v110_v23, %v114_v24  ;;  %v120_v33 = vsel %vm119_vm1, %v114_v24, %v118_v27  ;;  %v151_v34 = vsel %vm149_vm9, %v1032_v14, %v148_v30  ;;  %v1069_v51 = vstv %s688_s28 }
  0x53   :  { %v122_v35 = vsel %vm121_vm3, %v110_v23, %v120_v33  ;;  %v154_v36 = vsel %vm152_vm10, %v1048_v29, %v151_v34  ;;  %v1071_v52 = vstv %s689_s29  ;;  %v1073_v54 = vstv %s690_s30 }
  0x54   :  { %v165_v37 = vmax.f32 %v164_v32, %v118_v27  ;;  %v157_v38 = vsel %vm155_vm11, %v1052_v31, %v154_v36  ;;  %v1075_v55 = vstv %s691_s7  ;;  %v1077_v56 = vstv %s692_s8 }
  0x55   :  { %v158_v39 = vadd.f32 %v157_v38, %v122_v35 }
  0x56   :  { %v166_v40 = vsub.f32 %v110_v23, %v165_v37  ;;  %v169_v41 = vsub.f32 %v114_v24, %v165_v37  ;;  %v172_v42 = vsub.f32 %v118_v27, %v165_v37 }
  0x57   :  { %v1059_v43 = vadd.f32 %v162_v10, %v158_v39 }
  0x58   :  { %v167_v44 = vmul.f32 1.442695, %v166_v40  ;;  %v170_v45 = vmul.f32 1.442695, %v169_v41  ;;  %v173_v46 = vmul.f32 1.442695, %v172_v42 }
  0x5a   :  { %712 = vpow2.f32 %v167_v44 }
  0x5b   :  { %714 = vpow2.f32 %v170_v45 }
  0x5c   :  { %716 = vpow2.f32 %v173_v46 }
  0x64   :  { %v713_v53 = vpop.eup %712 }
  0x65   :  { %v715_v57 = vpop.eup %714  ;;  %v176_v58 = vmul.f32 %v713_v53, %v1061_v47  ;;  %v188_v59 = vmul.f32 %v713_v53, %v1063_v48  ;;  %v200_v60 = vmul.f32 %v713_v53, %v1065_v49 }
  0x66   :  { %v717_v61 = vpop.eup %716  ;;  %v178_v62 = vmul.f32 %v715_v57, %v1067_v50  ;;  %v190_v63 = vmul.f32 %v715_v57, %v1069_v51  ;;  %v202_v0 = vmul.f32 %v715_v57, %v1071_v52 }
  0x67   :  { %v180_v4 = vmul.f32 %v717_v61, %v1073_v54  ;;  %v192_v6 = vmul.f32 %v717_v61, %v1075_v55  ;;  %v204_v7 = vmul.f32 %v717_v61, %v1077_v56 }
  0x68   :  { %v181_v10 = vadd.f32 %v178_v62, %v176_v58  ;;  %v193_v11 = vadd.f32 %v190_v63, %v188_v59  ;;  %v205_v15 = vadd.f32 %v202_v0, %v200_v60 }
  0x6a   :  { %v182_v17 = vadd.f32 %v181_v10, %v180_v4  ;;  %v194_v18 = vadd.f32 %v193_v11, %v192_v6  ;;  %v206_v20 = vadd.f32 %v205_v15, %v204_v7 }
  0x6c   :  { %718 = vlog2.f32 %v182_v17 }
  0x6d   :  { %720 = vlog2.f32 %v194_v18  ;;  %v1100_v18 = vld [vmem:[#allocation12 + $0x6] sm:$0x1] }
  0x6e   :  { %722 = vlog2.f32 %v206_v20 }
  0x76   :  { %v719_v21 = vpop.eup %718 }
  0x77   :  { %v721_v22 = vpop.eup %720  ;;  %v184_v23 = vmul.f32 0.6931472, %v719_v21  ;;  %v1102_v21 = vld [vmem:[#allocation12 + $0x7] sm:$0x1] }
  0x78   :  { %v723_v24 = vpop.eup %722  ;;  %v196_v25 = vmul.f32 0.6931472, %v721_v22 }
  0x79   :  { %v185_v26 = vadd.f32 %v184_v23, %v165_v37  ;;  %v208_v27 = vmul.f32 0.6931472, %v723_v24  ;;  %v1104_v24 = vld [vmem:[#allocation12 + $0x8] sm:$0x1] }
  0x7a   :  { %v197_v28 = vadd.f32 %v196_v25, %v165_v37 }
  0x7b   :  { %v186_v30 = vadd.f32 %v185_v26, %v1016_v5  ;;  %v209_v32 = vadd.f32 %v208_v27, %v165_v37 }
  0x7c   :  { %v198_v33 = vadd.f32 %v197_v28, %v1005_v2 }
  0x7d   :  { %v210_v34 = vadd.f32 %v209_v32, %v1007_v3 }
  0x7e   :  { %v243_v35 = vmax.f32 %v186_v30, %v198_v33 }
  0x80   :  { %v244_v36 = vmax.f32 %v243_v35, %v210_v34 }
  0x82   :  { %v245_v38 = vsub.f32 %v186_v30, %v244_v36  ;;  %v248_v39 = vsub.f32 %v198_v33, %v244_v36  ;;  %v251_v40 = vsub.f32 %v210_v34, %v244_v36 }
  0x84   :  { %v246_v41 = vmul.f32 1.442695, %v245_v38  ;;  %v249_v42 = vmul.f32 1.442695, %v248_v39  ;;  %v252_v44 = vmul.f32 1.442695, %v251_v40 }
  0x86   :  { %724 = vpow2.f32 %v246_v41 }
  0x87   :  { %726 = vpow2.f32 %v249_v42 }
  0x88   :  { %728 = vpow2.f32 %v252_v44 }
  0x90   :  { %v725_v45 = vpop.eup %724 }
  0x91   :  { %v727_v46 = vpop.eup %726  ;;  %v254_v5 = vmul.f32 %v725_v45, %v1061_v47  ;;  %v263_v37 = vmul.f32 %v725_v45, %v1063_v48  ;;  %v272_v2 = vmul.f32 %v725_v45, %v1065_v49 }
  0x92   :  { %v729_v3 = vpop.eup %728  ;;  %v255_v53 = vmul.f32 %v727_v46, %v1067_v50  ;;  %v264_v57 = vmul.f32 %v727_v46, %v1069_v51  ;;  %v273_v58 = vmul.f32 %v727_v46, %v1071_v52 }
  0x93   :  { %v256_v59 = vmul.f32 %v729_v3, %v1073_v54  ;;  %v265_v60 = vmul.f32 %v729_v3, %v1075_v55  ;;  %v274_v61 = vmul.f32 %v729_v3, %v1077_v56 }
  0x94   :  { %v257_v62 = vadd.f32 %v255_v53, %v254_v5  ;;  %v266_v63 = vadd.f32 %v264_v57, %v263_v37  ;;  %v275_v0 = vadd.f32 %v273_v58, %v272_v2 }
  0x96   :  { %v258_v4 = vadd.f32 %v257_v62, %v256_v59  ;;  %v267_v6 = vadd.f32 %v266_v63, %v265_v60  ;;  %v276_v7 = vadd.f32 %v275_v0, %v274_v61 }
  0x98   :  { %730 = vlog2.f32 %v258_v4 }
  0x99   :  { %732 = vlog2.f32 %v267_v6 }
  0x9a   :  { %734 = vlog2.f32 %v276_v7 }
  0xa2   :  { %v731_v10 = vpop.eup %730 }
  0xa3   :  { %v733_v11 = vpop.eup %732  ;;  %v260_v15 = vmul.f32 0.6931472, %v731_v10 }
  0xa4   :  { %v735_v17 = vpop.eup %734  ;;  %v269_v20 = vmul.f32 0.6931472, %v733_v11  ;;  %v1118_v11 = vld [vmem:[#allocation12 + $0x9] sm:$0x1] }
  0xa5   :  { %v261_v22 = vadd.f32 %v260_v15, %v244_v36  ;;  %v278_v23 = vmul.f32 0.6931472, %v735_v17  ;;  %v1120_v17 = vld [vmem:[#allocation12 + $0xa] sm:$0x1] }
  0xa6   :  { %v270_v25 = vadd.f32 %v269_v20, %v244_v36 }
  0xa7   :  { %v262_v26 = vadd.f32 %v261_v22, %v1100_v18  ;;  %v279_v27 = vadd.f32 %v278_v23, %v244_v36  ;;  %v1122_v23 = vld [vmem:[#allocation12 + $0xb] sm:$0x1] }
  0xa8   :  { %v271_v28 = vadd.f32 %v270_v25, %v1102_v21 }
  0xa9   :  { %v280_v30 = vadd.f32 %v279_v27, %v1104_v24 }
  0xaa   :  { %v313_v32 = vmax.f32 %v262_v26, %v271_v28 }
  0xac   :  { %v314_v33 = vmax.f32 %v313_v32, %v280_v30 }
  0xae   :  { %v315_v34 = vsub.f32 %v262_v26, %v314_v33  ;;  %v318_v35 = vsub.f32 %v271_v28, %v314_v33  ;;  %v321_v38 = vsub.f32 %v280_v30, %v314_v33 }
  0xb0   :  { %v316_v39 = vmul.f32 1.442695, %v315_v34  ;;  %v319_v40 = vmul.f32 1.442695, %v318_v35  ;;  %v322_v41 = vmul.f32 1.442695, %v321_v38 }
  0xb2   :  { %736 = vpow2.f32 %v316_v39 }
  0xb3   :  { %738 = vpow2.f32 %v319_v40 }
  0xb4   :  { %740 = vpow2.f32 %v322_v41 }
  0xbc   :  { %v737_v42 = vpop.eup %736 }
  0xbd   :  { %v739_v44 = vpop.eup %738  ;;  %v324_v45 = vmul.f32 %v737_v42, %v1061_v47  ;;  %v333_v36 = vmul.f32 %v737_v42, %v1063_v48  ;;  %v342_v46 = vmul.f32 %v737_v42, %v1065_v49 }
  0xbe   :  { %v741_v5 = vpop.eup %740  ;;  %v325_v37 = vmul.f32 %v739_v44, %v1067_v50  ;;  %v334_v2 = vmul.f32 %v739_v44, %v1069_v51  ;;  %v343_v3 = vmul.f32 %v739_v44, %v1071_v52 }
  0xbf   :  { %v326_v53 = vmul.f32 %v741_v5, %v1073_v54  ;;  %v335_v57 = vmul.f32 %v741_v5, %v1075_v55  ;;  %v344_v58 = vmul.f32 %v741_v5, %v1077_v56 }
  0xc0   :  { %v327_v59 = vadd.f32 %v325_v37, %v324_v45  ;;  %v336_v60 = vadd.f32 %v334_v2, %v333_v36  ;;  %v345_v61 = vadd.f32 %v343_v3, %v342_v46 }
  0xc2   :  { %v328_v62 = vadd.f32 %v327_v59, %v326_v53  ;;  %v337_v63 = vadd.f32 %v336_v60, %v335_v57  ;;  %v346_v0 = vadd.f32 %v345_v61, %v344_v58 }
  0xc4   :  { %742 = vlog2.f32 %v328_v62 }
  0xc5   :  { %744 = vlog2.f32 %v337_v63 }
  0xc6   :  { %746 = vlog2.f32 %v346_v0 }
  0xce   :  { %v743_v4 = vpop.eup %742 }
  0xcf   :  { %v745_v6 = vpop.eup %744  ;;  %v330_v7 = vmul.f32 0.6931472, %v743_v4 }
  0xd0   :  { %v747_v10 = vpop.eup %746  ;;  %v339_v15 = vmul.f32 0.6931472, %v745_v6 }
  0xd1   :  { %v331_v20 = vadd.f32 %v330_v7, %v314_v33  ;;  %v348_v22 = vmul.f32 0.6931472, %v747_v10 }
  0xd2   :  { %v340_v25 = vadd.f32 %v339_v15, %v314_v33  ;;  %v1136_v15 = vld [vmem:[#allocation12 + $0xc] sm:$0x1] }
  0xd3   :  { %v332_v26 = vadd.f32 %v331_v20, %v1118_v11  ;;  %v349_v27 = vadd.f32 %v348_v22, %v314_v33  ;;  %v1138_v22 = vld [vmem:[#allocation12 + $0xd] sm:$0x1] }
  0xd4   :  { %v341_v28 = vadd.f32 %v340_v25, %v1120_v17 }
  0xd5   :  { %v350_v30 = vadd.f32 %v349_v27, %v1122_v23  ;;  %v1140_v27 = vld [vmem:[#allocation12 + $0xe] sm:$0x1] }
  0xd6   :  { %v383_v32 = vmax.f32 %v332_v26, %v341_v28 }
  0xd8   :  { %v384_v34 = vmax.f32 %v383_v32, %v350_v30 }
  0xda   :  { %v385_v35 = vsub.f32 %v332_v26, %v384_v34  ;;  %v388_v38 = vsub.f32 %v341_v28, %v384_v34  ;;  %v391_v39 = vsub.f32 %v350_v30, %v384_v34 }
  0xdc   :  { %v386_v40 = vmul.f32 1.442695, %v385_v35  ;;  %v389_v41 = vmul.f32 1.442695, %v388_v38  ;;  %v392_v42 = vmul.f32 1.442695, %v391_v39 }
  0xde   :  { %748 = vpow2.f32 %v386_v40 }
  0xdf   :  { %750 = vpow2.f32 %v389_v41 }
  0xe0   :  { %752 = vpow2.f32 %v392_v42 }
  0xe8   :  { %v749_v44 = vpop.eup %748 }
  0xe9   :  { %v751_v45 = vpop.eup %750  ;;  %v394_v36 = vmul.f32 %v749_v44, %v1061_v47  ;;  %v403_v33 = vmul.f32 %v749_v44, %v1063_v48  ;;  %v412_v46 = vmul.f32 %v749_v44, %v1065_v49 }
  0xea   :  { %v753_v5 = vpop.eup %752  ;;  %v395_v37 = vmul.f32 %v751_v45, %v1067_v50  ;;  %v404_v2 = vmul.f32 %v751_v45, %v1069_v51  ;;  %v413_v3 = vmul.f32 %v751_v45, %v1071_v52 }
  0xeb   :  { %v396_v53 = vmul.f32 %v753_v5, %v1073_v54  ;;  %v405_v57 = vmul.f32 %v753_v5, %v1075_v55  ;;  %v414_v58 = vmul.f32 %v753_v5, %v1077_v56 }
  0xec   :  { %v397_v59 = vadd.f32 %v395_v37, %v394_v36  ;;  %v406_v60 = vadd.f32 %v404_v2, %v403_v33  ;;  %v415_v61 = vadd.f32 %v413_v3, %v412_v46 }
  0xee   :  { %v398_v62 = vadd.f32 %v397_v59, %v396_v53  ;;  %v407_v63 = vadd.f32 %v406_v60, %v405_v57  ;;  %v416_v0 = vadd.f32 %v415_v61, %v414_v58 }
  0xf0   :  { %754 = vlog2.f32 %v398_v62 }
  0xf1   :  { %756 = vlog2.f32 %v407_v63 }
  0xf2   :  { %758 = vlog2.f32 %v416_v0 }
  0xfa   :  { %v755_v4 = vpop.eup %754 }
  0xfb   :  { %v757_v6 = vpop.eup %756  ;;  %v400_v7 = vmul.f32 0.6931472, %v755_v4 }
  0xfc   :  { %v759_v10 = vpop.eup %758  ;;  %v409_v20 = vmul.f32 0.6931472, %v757_v6 }
  0xfd   :  { %v401_v25 = vadd.f32 %v400_v7, %v384_v34  ;;  %v418_v26 = vmul.f32 0.6931472, %v759_v10 }
  0xfe   :  { %v410_v28 = vadd.f32 %v409_v20, %v384_v34 }
  0xff   :  { %v402_v30 = vadd.f32 %v401_v25, %v1136_v15  ;;  %v419_v32 = vadd.f32 %v418_v26, %v384_v34 }
 0x100   :  { %v411_v35 = vadd.f32 %v410_v28, %v1138_v22  ;;  %v1154_v28 = vld [vmem:[#allocation12 + $0xf] sm:$0x1] }
 0x101   :  { %v420_v38 = vadd.f32 %v419_v32, %v1140_v27  ;;  %v1156_v32 = vld [vmem:[#allocation12 + $0x10] sm:$0x1] }
 0x102   :  { %v453_v39 = vmax.f32 %v402_v30, %v411_v35 }
 0x104   :  { %v454_v40 = vmax.f32 %v453_v39, %v420_v38  ;;  %v1158_v39 = vld [vmem:[#allocation12 + $0x11] sm:$0x1] }
 0x106   :  { %v455_v41 = vsub.f32 %v402_v30, %v454_v40  ;;  %v458_v42 = vsub.f32 %v411_v35, %v454_v40  ;;  %v461_v44 = vsub.f32 %v420_v38, %v454_v40 }
 0x108   :  { %v456_v45 = vmul.f32 1.442695, %v455_v41  ;;  %v459_v36 = vmul.f32 1.442695, %v458_v42  ;;  %v462_v33 = vmul.f32 1.442695, %v461_v44 }
 0x10a   :  { %760 = vpow2.f32 %v456_v45 }
 0x10b   :  { %762 = vpow2.f32 %v459_v36 }
 0x10c   :  { %764 = vpow2.f32 %v462_v33 }
 0x114   :  { %v761_v46 = vpop.eup %760 }
 0x115   :  { %v763_v5 = vpop.eup %762  ;;  %v464_v37 = vmul.f32 %v761_v46, %v1061_v47  ;;  %v473_v34 = vmul.f32 %v761_v46, %v1063_v48  ;;  %v482_v2 = vmul.f32 %v761_v46, %v1065_v49 }
 0x116   :  { %v765_v3 = vpop.eup %764  ;;  %v465_v53 = vmul.f32 %v763_v5, %v1067_v50  ;;  %v474_v57 = vmul.f32 %v763_v5, %v1069_v51  ;;  %v483_v58 = vmul.f32 %v763_v5, %v1071_v52 }
 0x117   :  { %v466_v59 = vmul.f32 %v765_v3, %v1073_v54  ;;  %v475_v60 = vmul.f32 %v765_v3, %v1075_v55  ;;  %v484_v61 = vmul.f32 %v765_v3, %v1077_v56 }
 0x118   :  { %v467_v62 = vadd.f32 %v465_v53, %v464_v37  ;;  %v476_v63 = vadd.f32 %v474_v57, %v473_v34  ;;  %v485_v0 = vadd.f32 %v483_v58, %v482_v2 }
 0x11a   :  { %v468_v4 = vadd.f32 %v467_v62, %v466_v59  ;;  %v477_v6 = vadd.f32 %v476_v63, %v475_v60  ;;  %v486_v7 = vadd.f32 %v485_v0, %v484_v61 }
 0x11c   :  { %766 = vlog2.f32 %v468_v4 }
 0x11d   :  { %768 = vlog2.f32 %v477_v6 }
 0x11e   :  { %770 = vlog2.f32 %v486_v7 }
 0x126   :  { %v767_v10 = vpop.eup %766 }
 0x127   :  { %v769_v20 = vpop.eup %768  ;;  %v470_v25 = vmul.f32 0.6931472, %v767_v10 }
 0x128   :  { %v771_v26 = vpop.eup %770  ;;  %v479_v30 = vmul.f32 0.6931472, %v769_v20 }
 0x129   :  { %v471_v35 = vadd.f32 %v470_v25, %v454_v40  ;;  %v488_v38 = vmul.f32 0.6931472, %v771_v26 }
 0x12a   :  { %v480_v41 = vadd.f32 %v479_v30, %v454_v40 }
 0x12b   :  { %v472_v42 = vadd.f32 %v471_v35, %v1154_v28  ;;  %v489_v44 = vadd.f32 %v488_v38, %v454_v40  ;;  %v219_v38 = vmul.u32 3, %v1003_v1  ;;  %v1185_v1 = vld [vmem:[#allocation12 + $0x14] sm:$0x1] }
 0x12c   :  { %v481_v45 = vadd.f32 %v480_v41, %v1156_v32 }
 0x12d   :  { %v490_v36 = vadd.f32 %v489_v44, %v1158_v39 }
 0x12e   :  { %v523_v33 = vmax.f32 %v472_v42, %v481_v45 }
 0x130   :  { %v524_v46 = vmax.f32 %v523_v33, %v490_v36  ;;  %v1178_v33 = vld [vmem:[#allocation12 + $0x12] sm:$0x1] }
 0x132   :  { %v525_v5 = vsub.f32 %v472_v42, %v524_v46  ;;  %v528_v37 = vsub.f32 %v481_v45, %v524_v46  ;;  %v531_v34 = vsub.f32 %v490_v36, %v524_v46  ;;  %v1176_v42 = vld [vmem:[%s1453_s4 + $0x2] sm:$0x1] }
 0x133   :  { %vm238_vm11 = vcmp.eq.s32.totalorder %v1176_v42, 1 }
 0x134   :  { %v526_v2 = vmul.f32 1.442695, %v525_v5  ;;  %v529_v3 = vmul.f32 1.442695, %v528_v37  ;;  %v532_v53 = vmul.f32 1.442695, %v531_v34  ;;  %v1181_v37 = vadd.s32 %v1176_v42, %v219_v38 }
 0x135   :  { %v1183_v34 = vld [vmem:[#allocation12 + $0x13] sm:$0x1] }
 0x136   :  { %772 = vpow2.f32 %v526_v2  ;;  %vm221_vm12 = vcmp.eq.s32.totalorder %v1181_v37, 7  ;;  %vm223_vm13 = vcmp.eq.s32.totalorder %v1181_v37, 6  ;;  %vm225_vm14 = vcmp.eq.s32.totalorder %v1181_v37, 5 }
 0x137   :  { %774 = vpow2.f32 %v529_v3  ;;  %vm227_vm15 = vcmp.eq.s32.totalorder %v1181_v37, 4  ;;  %vm229_vm1 = vcmp.eq.s32.totalorder %v1181_v37, 3  ;;  %vm231_vm3 = vcmp.eq.s32.totalorder %v1181_v37, 2 }
 0x138   :  { %776 = vpow2.f32 %v532_v53  ;;  %vm233_vm5 = vcmp.eq.s32.totalorder %v1181_v37, 1  ;;  %vm235_vm8 = vcmp.eq.s32.totalorder %v1181_v37, 0 }
 0x140   :  { %v773_v57 = vpop.eup %772 }
 0x141   :  { %v775_v58 = vpop.eup %774  ;;  %v534_v59 = vmul.f32 %v773_v57, %v1061_v47  ;;  %v543_v40 = vmul.f32 %v773_v57, %v1063_v48  ;;  %v552_v60 = vmul.f32 %v773_v57, %v1065_v49 }
 0x142   :  { %v777_v61 = vpop.eup %776  ;;  %v535_v62 = vmul.f32 %v775_v58, %v1067_v50  ;;  %v544_v63 = vmul.f32 %v775_v58, %v1069_v51  ;;  %v553_v0 = vmul.f32 %v775_v58, %v1071_v52 }
 0x143   :  { %v536_v4 = vmul.f32 %v777_v61, %v1073_v54  ;;  %v545_v6 = vmul.f32 %v777_v61, %v1075_v55  ;;  %v554_v7 = vmul.f32 %v777_v61, %v1077_v56  ;;  %v222_v61 = vsel %vm221_vm12, %v1022_v8, %v1024_v9 }
 0x144   :  { %v537_v10 = vadd.f32 %v535_v62, %v534_v59  ;;  %v546_v20 = vadd.f32 %v544_v63, %v543_v40  ;;  %v555_v25 = vadd.f32 %v553_v0, %v552_v60  ;;  %v289_v62 = vmul.u32 3, %v1176_v42 }
 0x146   :  { %v538_v26 = vadd.f32 %v537_v10, %v536_v4  ;;  %v547_v30 = vadd.f32 %v546_v20, %v545_v6  ;;  %v556_v35 = vadd.f32 %v555_v25, %v554_v7  ;;  %v224_v7 = vsel %vm223_vm13, %v1027_v12, %v222_v61 }
 0x148   :  { %778 = vlog2.f32 %v538_v26 }
 0x149   :  { %780 = vlog2.f32 %v547_v30  ;;  %v226_v30 = vsel %vm225_vm14, %v1034_v16, %v224_v7  ;;  %vm240_vm14 = vcmp.eq.s32.totalorder %v1176_v42, 0 }
 0x14a   :  { %782 = vlog2.f32 %v556_v35  ;;  %v228_v35 = vsel %vm227_vm15, %v1039_v19, %v226_v30 }
 0x152   :  { %v779_v41 = vpop.eup %778 }
 0x153   :  { %v781_v44 = vpop.eup %780  ;;  %v540_v45 = vmul.f32 0.6931472, %v779_v41 }
 0x154   :  { %v783_v36 = vpop.eup %782  ;;  %v549_v5 = vmul.f32 0.6931472, %v781_v44  ;;  %v1222_v44 = vld [vmem:[%s1453_s4 + $0x4] sm:$0x1] }
 0x155   :  { %v541_v2 = vadd.f32 %v540_v45, %v524_v46  ;;  %v558_v3 = vmul.f32 0.6931472, %v783_v36  ;;  %v230_v45 = vsel %vm229_vm1, %v1029_v13, %v228_v35 }
 0x156   :  { %v550_v53 = vadd.f32 %v549_v5, %v524_v46 }
 0x157   :  { %v542_v57 = vadd.f32 %v541_v2, %v1178_v33  ;;  %v559_v58 = vadd.f32 %v558_v3, %v524_v46  ;;  %v1200_v46 = vld [vmem:[%s1453_s4 + $0x3] sm:$0x1]  ;;  %v232_v3 = vsel %vm231_vm3, %v1032_v14, %v230_v45 }
 0x158   :  { %v551_v59 = vadd.f32 %v550_v53, %v1183_v34  ;;  %v1208_v10 = vadd.s32 %v1200_v46, %v289_v62  ;;  %v359_v38 = vmul.u32 3, %v1200_v46 }
 0x159   :  { %v560_v40 = vadd.f32 %v559_v58, %v1185_v1 }
 0x15a   :  { %v593_v60 = vmax.f32 %v542_v57, %v551_v59  ;;  %vm291_vm0 = vcmp.eq.s32.totalorder %v1208_v10, 7  ;;  %vm293_vm2 = vcmp.eq.s32.totalorder %v1208_v10, 6  ;;  %vm295_vm4 = vcmp.eq.s32.totalorder %v1208_v10, 5 }
 0x15b   :  { %v292_v41 = vsel %vm291_vm0, %v1022_v8, %v1024_v9  ;;  %v1229_v5 = vadd.s32 %v1222_v44, %v359_v38  ;;  %vm297_vm6 = vcmp.eq.s32.totalorder %v1208_v10, 4  ;;  %vm299_vm9 = vcmp.eq.s32.totalorder %v1208_v10, 3 }
 0x15c   :  { %v1195_v63 = vmax.f32 %v593_v60, %v560_v40  ;;  %v294_v36 = vsel %vm293_vm2, %v1027_v12, %v292_v41  ;;  %vm301_vm12 = vcmp.eq.s32.totalorder %v1208_v10, 2  ;;  %v239_v41 = vsel %vm238_vm11, %v1102_v21, %v1104_v24 }
 0x15d   :  { %vm361_vm7 = vcmp.eq.s32.totalorder %v1229_v5, 7  ;;  %vm363_vm10 = vcmp.eq.s32.totalorder %v1229_v5, 6  ;;  %vm365_vm13 = vcmp.eq.s32.totalorder %v1229_v5, 5  ;;  %vm303_vm15 = vcmp.eq.s32.totalorder %v1208_v10, 1 }
 0x15e   :  { %v595_v0 = vsub.f32 %v542_v57, %v1195_v63  ;;  %v598_v4 = vsub.f32 %v551_v59, %v1195_v63  ;;  %v601_v6 = vsub.f32 %v560_v40, %v1195_v63  ;;  %v296_v57 = vsel %vm295_vm4, %v1034_v16, %v294_v36 }
 0x15f   :  { %vm308_vm0 = vcmp.eq.s32.totalorder %v1200_v46, 1  ;;  %vm367_vm1 = vcmp.eq.s32.totalorder %v1229_v5, 4  ;;  %v241_v21 = vsel %vm240_vm14, %v1100_v18, %v239_v41  ;;  %vm305_vm3 = vcmp.eq.s32.totalorder %v1208_v10, 0 }
 0x160   :  { %v596_v20 = vmul.f32 1.442695, %v595_v0  ;;  %v599_v25 = vmul.f32 1.442695, %v598_v4  ;;  %v602_v26 = vmul.f32 1.442695, %v601_v6  ;;  %v309_v42 = vsel %vm308_vm0, %v1120_v17, %v1122_v23 }
 0x161   :  { %vm310_vm4 = vcmp.eq.s32.totalorder %v1200_v46, 0  ;;  %vm380_vm0 = vcmp.eq.s32.totalorder %v1222_v44, 0 }
 0x162   :  { %784 = vpow2.f32 %v596_v20  ;;  %v311_v46 = vsel %vm310_vm4, %v1118_v11, %v309_v42 }
 0x163   :  { %786 = vpow2.f32 %v599_v25 }
 0x164   :  { %788 = vpow2.f32 %v602_v26 }
 0x16c   :  { %v785_v2 = vpop.eup %784 }
 0x16d   :  { %v787_v53 = vpop.eup %786  ;;  %v604_v58 = vmul.f32 %v785_v2, %v1061_v47  ;;  %v613_v59 = vmul.f32 %v785_v2, %v1063_v48  ;;  %v622_v40 = vmul.f32 %v785_v2, %v1065_v49  ;;  %v429_v48 = vmul.u32 3, %v1222_v44 }
 0x16e   :  { %v789_v60 = vpop.eup %788  ;;  %v605_v61 = vmul.f32 %v787_v53, %v1067_v50  ;;  %v614_v62 = vmul.f32 %v787_v53, %v1069_v51  ;;  %v623_v0 = vmul.f32 %v787_v53, %v1071_v52  ;;  %v234_v50 = vsel %vm233_vm5, %v1048_v29, %v232_v3 }
 0x16f   :  { %v606_v4 = vmul.f32 %v789_v60, %v1073_v54  ;;  %v615_v6 = vmul.f32 %v789_v60, %v1075_v55  ;;  %v624_v47 = vmul.f32 %v789_v60, %v1077_v56  ;;  %v298_v51 = vsel %vm297_vm6, %v1039_v19, %v296_v57  ;;  %v1259_v54 = vld [vmem:[%s1453_s4 + $0x5] sm:$0x1] }
 0x170   :  { %v607_v49 = vadd.f32 %v605_v61, %v604_v58  ;;  %v616_v7 = vadd.f32 %v614_v62, %v613_v59  ;;  %v625_v20 = vadd.f32 %v623_v0, %v622_v40  ;;  %v362_v52 = vsel %vm361_vm7, %v1022_v8, %v1024_v9  ;;  %v1321_v62 = vld [vmem:[#allocation12 + $0x15] sm:$0x1] }
 0x171   :  { %v236_v26 = vsel %vm235_vm8, %v1052_v31, %v234_v50  ;;  %v300_v30 = vsel %vm299_vm9, %v1029_v13, %v298_v51  ;;  %v1269_v35 = vadd.s32 %v1259_v54, %v429_v48  ;;  %v364_v38 = vsel %vm363_vm10, %v1027_v12, %v362_v52 }
 0x172   :  { %v608_v55 = vadd.f32 %v607_v49, %v606_v4  ;;  %v617_v56 = vadd.f32 %v616_v7, %v615_v6  ;;  %v626_v25 = vadd.f32 %v625_v20, %v624_v47  ;;  %v237_v37 = vadd.f32 %v236_v26, %v1059_v43  ;;  %v1288_v43 = vld [vmem:[%s1453_s4 + $0x6] sm:$0x1]  ;;  %v1336_v7 = vld [vmem:[#allocation12 + $0x17] sm:$0x1] }
 0x173   :  { %v302_v45 = vsel %vm301_vm12, %v1032_v14, %v300_v30  ;;  %v366_v36 = vsel %vm365_vm13, %v1034_v16, %v364_v38  ;;  %vm431_vm2 = vcmp.eq.s32.totalorder %v1269_v35, 7  ;;  %v499_v2 = vmul.u32 3, %v1259_v54 }
 0x174   :  { %790 = vlog2.f32 %v608_v55  ;;  %v304_v24 = vsel %vm303_vm15, %v1048_v29, %v302_v45  ;;  %v368_v18 = vsel %vm367_vm1, %v1039_v19, %v366_v36  ;;  %vm369_vm5 = vcmp.eq.s32.totalorder %v1229_v5, 3 }
 0x175   :  { %792 = vlog2.f32 %v617_v56  ;;  %v432_v3 = vsel %vm431_vm2, %v1022_v8, %v1024_v9  ;;  %vm433_vm6 = vcmp.eq.s32.totalorder %v1269_v35, 6  ;;  %v242_v53 = vadd.f32 %v241_v21, %v237_v37 }
 0x176   :  { %794 = vlog2.f32 %v626_v25  ;;  %vm378_vm7 = vcmp.eq.s32.totalorder %v1222_v44, 1  ;;  %v1308_v17 = vadd.s32 %v1288_v43, %v499_v2  ;;  %v306_v23 = vsel %vm305_vm3, %v1052_v31, %v304_v24 }
 0x177   :  { %v370_v57 = vsel %vm369_vm5, %v1029_v13, %v368_v18  ;;  %vm371_vm8 = vcmp.eq.s32.totalorder %v1229_v5, 2  ;;  %v434_v58 = vsel %vm433_vm6, %v1027_v12, %v432_v3  ;;  %vm435_vm9 = vcmp.eq.s32.totalorder %v1269_v35, 5 }
 0x178   :  { %vm373_vm10 = vcmp.eq.s32.totalorder %v1229_v5, 1  ;;  %v379_v40 = vsel %vm378_vm7, %v1138_v22, %v1140_v27  ;;  %vm437_vm11 = vcmp.eq.s32.totalorder %v1269_v35, 4  ;;  %v307_v11 = vadd.f32 %v306_v23, %v242_v53  ;;  %v1329_v22 = vld [vmem:[%s1453_s4 + $0x7] sm:$0x1]  ;;  %v1331_v27 = vld [vmem:[#allocation12 + $0x16] sm:$0x1] }
 0x179   :  { %vm501_vm12 = vcmp.eq.s32.totalorder %v1308_v17, 7  ;;  %v569_v0 = vmul.u32 3, %v1288_v43  ;;  %v372_v6 = vsel %vm371_vm8, %v1032_v14, %v370_v57  ;;  %v436_v47 = vsel %vm435_vm9, %v1034_v16, %v434_v58  ;;  %s911_s4 = smov [#allocation13]  }
 0x17a   :  { %vm439_vm13 = vcmp.eq.s32.totalorder %v1269_v35, 3  ;;  %vm503_vm14 = vcmp.eq.s32.totalorder %v1308_v17, 6  ;;  %v634_v50 = vstv %s1290_s18  ;;  %v502_v51 = vsel %vm501_vm12, %v1022_v8, %v1024_v9  ;;  %s664_s22 = sshll.u32 %s911_s4, 4  ;;  %s665_s22 = int_to_ptr.vmem [resolvable:$true] %s664_s22 }
 0x17b   :  { %v631_v56 = vstv %s1297_s5  ;;  %v438_v25 = vsel %vm437_vm11, %v1039_v19, %v436_v47  ;;  %v1349_v26 = vadd.s32 %v1329_v22, %v569_v0  ;;  %v632_v38 = vstv %s1304_s19  ;;  %s870_s23 = scalar_lea.vmem %s665_s22, 16  ;;  %s874_s1 = scalar_lea.vmem %s665_s22, 32 }
 0x17c   :  { %v374_v41 = vsel %vm373_vm10, %v1048_v29, %v372_v6  ;;  %vm375_vm15 = vcmp.eq.s32.totalorder %v1229_v5, 0  ;;  %v504_v45 = vsel %vm503_vm14, %v1027_v12, %v502_v51  ;;  %vm505_vm1 = vcmp.eq.s32.totalorder %v1308_v17, 5  ;;  %p871_p10 = scmp.ne.s32.totalorder %s665_s22, %s870_s23  ;;  %p875_p11 = scmp.lt.s32.totalorder %s665_s22, %s665_s22 }
 0x17d   :  { %v312_v2 = vadd.f32 %v311_v46, %v307_v11  ;;  %v440_v21 = vsel %vm439_vm13, %v1029_v13, %v438_v25  ;;  %vm441_vm2 = vcmp.eq.s32.totalorder %v1269_v35, 2  ;;  %v376_v24 = vsel %vm375_vm15, %v1052_v31, %v374_v41  ;;  %p876_p12 = scmp.lt.s32.totalorder %s874_s1, %s870_s23 }
 0x17e   :  { %v791_v10 = vpop.eup %790  ;;  %vm571_vm3 = vcmp.eq.s32.totalorder %v1349_v26, 7  ;;  %v506_v42 = vsel %vm505_vm1, %v1034_v16, %v504_v45  ;;  %vm507_vm4 = vcmp.eq.s32.totalorder %v1308_v17, 4  ;;  %v381_v18 = vsel %vm380_vm0, %v1136_v15, %v379_v40 }
 0x17f   :  { %v793_v59 = vpop.eup %792  ;;  %v610_v60 = vmul.f32 0.6931472, %v791_v10  ;;  %v442_v3 = vsel %vm441_vm2, %v1032_v14, %v440_v21  ;;  %vm443_vm5 = vcmp.eq.s32.totalorder %v1269_v35, 1  ;;  %v377_v23 = vadd.f32 %v376_v24, %v312_v2  ;;  %p877_p13 = por %p876_p12, %p875_p11 }
 0x180   :  { %v795_v61 = vpop.eup %794  ;;  %v619_v4 = vmul.f32 0.6931472, %v793_v59  ;;  %vm509_vm6 = vcmp.eq.s32.totalorder %v1308_v17, 3  ;;  %v572_v46 = vsel %vm571_vm3, %v1022_v8, %v1024_v9  ;;  %vm573_vm7 = vcmp.eq.s32.totalorder %v1349_v26, 6 }
 0x181   :  { %v611_v48 = vadd.f32 %v610_v60, %v1195_v63  ;;  %v628_v49 = vmul.f32 0.6931472, %v795_v61  ;;  %v508_v10 = vsel %vm507_vm4, %v1039_v19, %v506_v42  ;;  %v444_v59 = vsel %vm443_vm5, %v1048_v29, %v442_v3  ;;  %p878_p0 = pnand %p877_p13, %p871_p10 }
 0x182   :  { %v620_v20 = vadd.f32 %v619_v4, %v1195_v63  ;;  %vm445_vm8 = vcmp.eq.s32.totalorder %v1269_v35, 0  ;;  %vm448_vm9 = vcmp.eq.s32.totalorder %v1259_v54, 1  ;;  %vm575_vm10 = vcmp.eq.s32.totalorder %v1349_v26, 5 }
 0x183   :  { %v612_v52 = vadd.f32 %v611_v48, %v1321_v62  ;;  %v629_v55 = vadd.f32 %v628_v49, %v1195_v63  ;;  %v574_v8 = vsel %vm573_vm7, %v1027_v12, %v572_v46  ;;  %v382_v61 = vadd.f32 %v381_v18, %v377_v23 }
 0x184   :  { %v621_v30 = vadd.f32 %v620_v20, %v1331_v27  ;;  %v510_v11 = vsel %vm509_vm6, %v1029_v13, %v508_v10  ;;  %vm511_vm11 = vcmp.eq.s32.totalorder %v1308_v17, 2  ;;  %v446_v0 = vsel %vm445_vm8, %v1052_v31, %v444_v59 }
 0x185   :  { %v630_v63 = vadd.f32 %v629_v55, %v1336_v7  ;;  %v637_v37 = vadd.f32 %v634_v50, %v612_v52  ;;  %vm450_vm12 = vcmp.eq.s32.totalorder %v1259_v54, 0  ;;  %v449_v35 = vsel %vm448_vm9, %v1156_v32, %v1158_v39 }
 0x186   :  { %v638_v36 = vadd.f32 %v631_v56, %v621_v30  ;;  %v576_v12 = vsel %vm575_vm10, %v1034_v16, %v574_v8  ;;  %vm577_vm13 = vcmp.eq.s32.totalorder %v1349_v26, 4  ;;  %v512_v4 = vsel %vm511_vm11, %v1032_v14, %v510_v11 }
 0x187   :  { %v639_v5 = vadd.f32 %v632_v38, %v630_v63  ;;  %vm513_vm14 = vcmp.eq.s32.totalorder %v1308_v17, 1  ;;  %v447_v6 = vadd.f32 %v446_v0, %v382_v61  ;;  %v451_v47 = vsel %vm450_vm12, %v1154_v28, %v449_v35 }
 0x188   :  { %v640_v44 = vmax.f32 %v637_v37, %v638_v36  ;;  %v578_v48 = vsel %vm577_vm13, %v1039_v19, %v576_v12  ;;  %vm579_vm15 = vcmp.eq.s32.totalorder %v1349_v26, 3  ;;  %v514_v54 = vsel %vm513_vm14, %v1048_v29, %v512_v4 }
 0x189   :  { %vm515_vm0 = vcmp.eq.s32.totalorder %v1308_v17, 0  ;;  %vm518_vm1 = vcmp.eq.s32.totalorder %v1288_v43, 1  ;;  %v452_v16 = vadd.f32 %v451_v47, %v447_v6  ;;  %v580_v32 = vsel %vm579_vm15, %v1029_v13, %v578_v48 }
 0x18a   :  { %v1380_v53 = vmax.f32 %v640_v44, %v639_v5  ;;  %vm581_vm2 = vcmp.eq.s32.totalorder %v1349_v26, 2  ;;  %v516_v39 = vsel %vm515_vm0, %v1052_v31, %v514_v54  ;;  %v519_v28 = vsel %vm518_vm1, %v1183_v34, %v1185_v1 }
 0x18b   :  { %vm520_vm3 = vcmp.eq.s32.totalorder %v1288_v43, 0  ;;  %v582_v49 = vsel %vm581_vm2, %v1032_v14, %v580_v32  ;;  %vm583_vm4 = vcmp.eq.s32.totalorder %v1349_v26, 1  ;;  %v517_v20 = vadd.f32 %v516_v39, %v452_v16 }
 0x18c   :  { %v642_v57 = vsub.f32 %v637_v37, %v1380_v53  ;;  %v645_v15 = vsub.f32 %v638_v36, %v1380_v53  ;;  %v648_v58 = vsub.f32 %v639_v5, %v1380_v53  ;;  %v521_v13 = vsel %vm520_vm3, %v1178_v33, %v519_v28 }
 0x18d   :  { %v584_v55 = vsel %vm583_vm4, %v1048_v29, %v582_v49  ;;  %vm585_vm5 = vcmp.eq.s32.totalorder %v1349_v26, 0  ;;  %vm588_vm6 = vcmp.eq.s32.totalorder %v1329_v22, 1  ;;  %v522_v1 = vadd.f32 %v521_v13, %v517_v20 }
 0x18e   :  { %v643_v9 = vmul.f32 1.442695, %v642_v57  ;;  %v646_v40 = vmul.f32 1.442695, %v645_v15  ;;  %v649_v60 = vmul.f32 1.442695, %v648_v58  ;;  %v586_v14 = vsel %vm585_vm5, %v1052_v31, %v584_v55 }
 0x18f   :  { %v589_v43 = vsel %vm588_vm6, %v1331_v27, %v1336_v7  ;;  %vm590_vm7 = vcmp.eq.s32.totalorder %v1329_v22, 0  ;;  %v587_v25 = vadd.f32 %v586_v14, %v522_v1  ;;  %v633_v29 = vsel %vm588_vm6, %v631_v56, %v632_v38 }
 0x190   :  { %796 = vpow2.f32 %v643_v9  ;;  %v591_v33 = vsel %vm590_vm7, %v1321_v62, %v589_v43  ;;  %v635_v26 = vsel %vm590_vm7, %v634_v50, %v633_v29 }
 0x191   :  { %798 = vpow2.f32 %v646_v40  ;;  %v592_v30 = vadd.f32 %v591_v33, %v587_v25 }
 0x192   :  { %800 = vpow2.f32 %v649_v60 }
 0x193   :  { %v636_v63 = vadd.f32 %v635_v26, %v592_v30 }
 0x19a   :  { %v797_v19 = vpop.eup %796 }
 0x19b   :  { %v799_v17 = vpop.eup %798 }
 0x19c   :  { %v801_v51 = vpop.eup %800  ;;  %v651_v52 = vadd.f32 %v799_v17, %v797_v19 }
 0x19e   :  { %v652_v34 = vadd.f32 %v801_v51, %v651_v52 }
 0x1a0   :  { %802 = vlog2.f32 %v652_v34 }
 0x1aa   :  { %v803_v41 = vpop.eup %802 }
 0x1ab   :  { %v654_v37 = vmul.f32 0.6931472, %v803_v41 }
 0x1ad   :  { %v655_v31 = vadd.f32 %v654_v37, %v1380_v53 }
 0x1af   :  { %v656_v45 = vsub.f32 %v655_v31, %v636_v63 }
 0x1b1   :  { %657 = vst [vmem:[#allocation13] sm:$0x1] %v656_v45 }
 0x1b2   :  { %881 = shalt.err (!%p878_p0)
}
 0x1b3   :  { %s882_s24 = scalar_lea.hbm %s1455_s6, 16 }
 0x1b4   :  { %p883_p1 = scmp.ne.s32.totalorder %s1455_s6, %s882_s24  ;;  %p886_p2 = scmp.lt.u32.totalorder %s882_s24, %s1455_s6 }
 0x1b6   :  { %p888_p3 = pnand %p886_p2, %p883_p1 }
 0x1b8   :  { %891 = shalt.err (!%p888_p3)
}
 0x1b9   :  { %667 = dma.vmem_to_hbm [thread:$0]  %s665_s22, 16, %s1455_s6, [#allocation4]  }
 0x1ba   :  { %902 = dma.done.wait [#allocation4], 16  }
 0x1bb   :  { %903 = vsyncadd [#allocation4], 4294967280 }
 0x1bc   :  { %671 = vsyncpa [#allocation3], 1 }
 0x1bd   :  { %672 = vsyncpa [#allocation4], 1 }
 0x1be   :  { %673 = vsyncpa [#allocation5], 1 }
 0x1bf   :  { %674 = vsyncpa [#allocation8], 1 }
 0x1c0   :  { %675 = vsyncpa [#allocation6], 1 }
 0x1c1   :  { %676 = vsyncpa [#allocation11], 1 }

</bundles_post_ra>
